<compile_context>
chip_gen: v5e
topology: v5e:2x2
jax: 0.10.0
libtpu: 0.0.40
codegen_flags: <defaults>
</compile_context>

<pallas_src>
import jax
import jax.numpy as jnp
from jax import lax
from jax.experimental import pallas as pl
from jax.experimental.pallas import tpu as pltpu


# ----------------------------------------------------------------------------
# helpers
# ----------------------------------------------------------------------------
def _full_spec(shape):
    """BlockSpec covering a whole (small) parameter array, same block every step."""
    nd = len(shape)
    return pl.BlockSpec(shape, lambda *_: (0,) * nd)


# ----------------------------------------------------------------------------
# Kernel 1: synthetic baseFAC encoder layer + fused ClsLayers head + fused
#           GRU input projections.  grid = (B // bt,), "parallel".
# ----------------------------------------------------------------------------
def _encoder_cls_kernel(x_ref, m_ref,
                        wq, bq, wk, bk, wv, bv, wo, bo,
                        g1, beta1, wf1, bf1, wf2, bf2, g2, beta2,
                        w_cls, v_cls, wlin_cls, blin_cls,
                        wi_gru, bi_gru,
                        cls_ref, attw_ref, xproj_ref):
    Bt, S, H = x_ref.shape
    x3 = x_ref[...]                               # (Bt, S, H) f32
    m = m_ref[...]                                # (Bt, S)    f32
    x2 = x3.reshape(Bt * S, H)
    xb = x2.astype(jnp.bfloat16)

    def ln(y, g, b):
        # single-pass mean / mean-of-squares LayerNorm (f32)
        mu = jnp.mean(y, axis=-1, keepdims=True)
        msq = jnp.mean(y * y, axis=-1, keepdims=True)
        return (y - mu) * lax.rsqrt(msq - mu * mu + 1e-5) * g[...] + b[...]

    # --- self attention (bf16 MXU operands, f32 accumulation) ---
    q = jnp.dot(xb, wq[...], preferred_element_type=jnp.float32) + bq[...]
    k = jnp.dot(xb, wk[...], preferred_element_type=jnp.float32) + bk[...]
    v = jnp.dot(xb, wv[...], preferred_element_type=jnp.float32) + bv[...]
    q3 = q.reshape(Bt, S, H).astype(jnp.bfloat16)
    k3 = k.reshape(Bt, S, H).astype(jnp.bfloat16)
    v3 = v.reshape(Bt, S, H).astype(jnp.bfloat16)

    scores = jnp.einsum('bqd,bkd->bqk', q3, k3,
                        preferred_element_type=jnp.float32)
    scores = scores * (H ** -0.5)
    scores = scores + (1.0 - m)[:, None, :] * jnp.float32(-1e9)   # mask padded keys
    scores = scores - jnp.max(scores, axis=-1, keepdims=True)
    e = jnp.exp(scores)
    p = e * pl.reciprocal(jnp.sum(e, axis=-1, keepdims=True), approx=True)

    ctx = jnp.einsum('bqk,bkd->bqd', p.astype(jnp.bfloat16), v3,
                     preferred_element_type=jnp.float32)
    ctx2 = ctx.reshape(Bt * S, H).astype(jnp.bfloat16)
    attn = jnp.dot(ctx2, wo[...], preferred_element_type=jnp.float32) + bo[...]
    h1 = ln(x2 + attn, g1, beta1)

    # --- FFN ---
    f = jnp.dot(h1.astype(jnp.bfloat16), wf1[...],
                preferred_element_type=jnp.float32) + bf1[...]
    f = 0.5 * f * (1.0 + jnp.tanh(0.7978845608028654 * (f + 0.044715 * f * f * f)))
    f = jnp.dot(f.astype(jnp.bfloat16), wf2[...],
                preferred_element_type=jnp.float32) + bf2[...]
    h2 = ln(h1 + f, g2, beta2)                    # (Bt*S, H) f32 = "hidden"
    h2b = h2.astype(jnp.bfloat16)
    h3 = h2.reshape(Bt, S, H)

    # --- ClsLayers fused epilogue (dropout = identity) ---
    raw = jnp.dot(h2b, w_cls[...], preferred_element_type=jnp.float32)      # (Bt*S, H)
    tanh3 = jnp.tanh(raw).reshape(Bt, S, H)
    sc = jnp.sum(tanh3 * v_cls[...], axis=-1)                               # (Bt, S)
    sc = jnp.where(m > 0.0, sc, jnp.float32(-1e30))    # finite: no NaN if row all-masked
    sc = sc - jnp.max(sc, axis=-1, keepdims=True)
    es = jnp.exp(sc)
    w_att = es * pl.reciprocal(jnp.sum(es, axis=-1, keepdims=True), approx=True)

    context = jnp.sum(w_att[:, :, None] * h3, axis=1)                       # (Bt, H)
    cls = jnp.dot(context.astype(jnp.bfloat16), wlin_cls[...],
                  preferred_element_type=jnp.float32) + blin_cls[...]       # (Bt, C)

    cls_ref[...] = cls
    attw_ref[...] = w_att

    # --- GRU input projections hoisted out of the recurrence: hidden @ [Wir|Wiz|Win] ---
    xp = jnp.dot(h2b, wi_gru[...], preferred_element_type=jnp.float32) + bi_gru[...]
    xproj_ref[...] = xp.reshape(Bt, S, xp.shape[-1]).astype(xproj_ref.dtype)


def encoder_cls_xproj(x, mask_row, p, *, bt=None):
    B, S, H = x.shape
    C = p["cls_lin_b"].shape[-1]
    G3 = p["gru_wi"].shape[-1]
    if bt is None:
        bt = min(B, max(1, 256 // S))   # fatten MXU M dim: bt*S rows per matmul
    while B % bt:
        bt -= 1
    args = [p["wq"], p["bq"], p["wk"], p["bk"], p["wv"], p["bv"], p["wo"], p["bo"],
            p["ln1_g"], p["ln1_b"], p["wf1"], p["bf1"], p["wf2"], p["bf2"],
            p["ln2_g"], p["ln2_b"],
            p["cls_w"], p["cls_v"], p["cls_lin_w"], p["cls_lin_b"],
            p["gru_wi"], p["gru_bi"]]
    in_specs = [pl.BlockSpec((bt, S, H), lambda i: (i, 0, 0)),
                pl.BlockSpec((bt, S), lambda i: (i, 0))]
    in_specs += [_full_spec(a.shape) for a in args]
    return pl.pallas_call(
        _encoder_cls_kernel,
        out_shape=(jax.ShapeDtypeStruct((B, C), jnp.float32),
                   jax.ShapeDtypeStruct((B, S), jnp.float32),
                   jax.ShapeDtypeStruct((B, S, G3), jnp.bfloat16)),
        grid=(B // bt,),
        in_specs=in_specs,
        out_specs=(pl.BlockSpec((bt, C), lambda i: (i, 0)),
                   pl.BlockSpec((bt, S), lambda i: (i, 0)),
                   pl.BlockSpec((bt, S, G3), lambda i: (i, 0, 0))),
        compiler_params=pltpu.CompilerParams(dimension_semantics=("parallel",)),
    )(x, mask_row, *args)


# ----------------------------------------------------------------------------
# Kernel 2: GRU recurrence (input projections precomputed) + Linear(G,1) +
# Sigmoid, times mask.  As in the PyTorch module, nn.GRU (batch_first=False)
# scans axis 0 of the (B,S,H) hidden states: time = B, GRU batch = S.
# grid = (S // tS, B): S-tiles "parallel" (independent recurrences, shardable
# across TensorCores), time axis "arbitrary" (sequential, carries h_scratch).
# ----------------------------------------------------------------------------
def _gru_exp_kernel(xp_ref, m_ref, wh, bh, wlin, blin, out_ref, h_scr):
    t = pl.program_id(1)

    @pl.when(t == 0)
    def _():
        h_scr[...] = jnp.zeros_like(h_scr)

    G = h_scr.shape[-1]
    xp = xp_ref[0].astype(jnp.float32)            # (tS, 3G)  precomputed x@Wi + bi
    h = h_scr[...]                                # (tS, G)   carried state (f32)

    # single concatenated hidden projection: h @ [Whr|Whz|Whn] + [bhr|bhz|bhn]
    hp = jnp.dot(h.astype(jnp.bfloat16), wh[...],
                 preferred_element_type=jnp.float32) + bh[...]   # (tS, 3G)

    r = jax.nn.sigmoid(xp[:, :G] + hp[:, :G])
    z = jax.nn.sigmoid(xp[:, G:2 * G] + hp[:, G:2 * G])
    n = jnp.tanh(xp[:, 2 * G:] + r * hp[:, 2 * G:])              # bhn stays inside r*(...)
    h_new = (1.0 - z) * n + z * h
    h_scr[...] = h_new

    # exp head: Linear(G,1) computed as (1,G)x(tS,G)^T -> lane-dense (1,tS)
    logits = lax.dot_general(wlin[...], h_new.astype(jnp.bfloat16),
                             (((1,), (1,)), ((), ())),
                             preferred_element_type=jnp.float32)  # (1, tS)
    out_ref[...] = jax.nn.sigmoid(logits + blin[...]) * m_ref[...]


def gru_exp_head(xproj, mask_row, p, *, ts=None):
    B, S, G3 = xproj.shape
    G = p["gru_wh"].shape[0]
    ts = S if ts is None else ts
    n_s = S // ts
    args = [p["gru_wh"], p["gru_bh"], p["exp_lin_w"], p["exp_lin_b"]]
    in_specs = [pl.BlockSpec((1, ts, G3), lambda si, t: (t, si, 0)),
                pl.BlockSpec((1, ts), lambda si, t: (t, si))]
    in_specs += [_full_spec(a.shape) for a in args]
    return pl.pallas_call(
        _gru_exp_kernel,
        out_shape=jax.ShapeDtypeStruct((B, S), jnp.float32),
        grid=(n_s, B),
        in_specs=in_specs,
        out_specs=pl.BlockSpec((1, ts), lambda si, t: (t, si)),
        scratch_shapes=[pltpu.VMEM((ts, G), jnp.float32)],
        compiler_params=pltpu.CompilerParams(
            dimension_semantics=("parallel", "arbitrary")),
    )(xproj, mask_row, *args)


# ----------------------------------------------------------------------------
# FACBERT forward
# ----------------------------------------------------------------------------
def facbert_forward(input_ids, attention_mask, p):
    B, S = input_ids.shape
    am = attention_mask.astype(jnp.float32)

    # baseFAC embeddings (glue) + fused encoder/cls/GRU-input-projection kernel
    x = p["word_emb"][input_ids] + p["pos_emb"][None, :S, :]
    cls_outputs, attention_weights, xproj = encoder_cls_xproj(x, am, p)

    # ExpLayers: GRU recurrence + Linear + Sigmoid, masked; lane-dense (B, S)
    exp_outputs = gru_exp_head(xproj, am, p)

    return cls_outputs, attention_weights, exp_outputs


# ----------------------------------------------------------------------------
# deterministic parameter init (synthetic; shapes follow the module __init__).
# Matmul weights stored pre-transposed to (in, out) and in bf16; biases/LN in f32.
# ----------------------------------------------------------------------------
def init_params(key, vocab, S, H, FFN, G, C):
    keys = iter(jax.random.split(key, 48))
    bf = jnp.bfloat16

    def nrm(shape, scale=0.1, dtype=jnp.float32):
        return (scale * jax.random.normal(next(keys), shape)).astype(dtype)

    p = {}
    # baseFAC (synthetic encoder)
    p["word_emb"] = nrm((vocab, H))
    p["pos_emb"] = nrm((S, H))
    for n in ("wq", "wk", "wv", "wo"):
        p[n] = nrm((H, H), dtype=bf)
        p["b" + n[1]] = nrm((1, H), 0.02)
    p["ln1_g"] = jnp.ones((1, H), jnp.float32)
    p["ln1_b"] = jnp.zeros((1, H), jnp.float32)
    p["wf1"] = nrm((H, FFN), dtype=bf)
    p["bf1"] = nrm((1, FFN), 0.02)
    p["wf2"] = nrm((FFN, H), dtype=bf)
    p["bf2"] = nrm((1, H), 0.02)
    p["ln2_g"] = jnp.ones((1, H), jnp.float32)
    p["ln2_b"] = jnp.zeros((1, H), jnp.float32)
    # ExpLayers: nn.GRU(H, G) — gate weights concatenated [r|z|n], (in, out) layout
    p["gru_wi"] = nrm((H, 3 * G), dtype=bf)
    p["gru_wh"] = nrm((G, 3 * G), dtype=bf)
    p["gru_bi"] = nrm((1, 3 * G), 0.02)
    p["gru_bh"] = nrm((1, 3 * G), 0.02)
    p["exp_lin_w"] = nrm((1, G), dtype=bf)        # nn.Linear(G, 1).weight is (1, G)
    p["exp_lin_b"] = nrm((1, 1), 0.02)
    # ClsLayers
    p["cls_v"] = jax.random.normal(next(keys), (1, H)).astype(jnp.float32)  # torch.randn(H,1) as row
    p["cls_w"] = nrm((H, H), dtype=bf)            # nn.Linear(H, H, bias=False).weight.T
    p["cls_lin_w"] = nrm((H, C), dtype=bf)        # nn.Linear(H, C).weight.T
    p["cls_lin_b"] = nrm((1, C), 0.02)
    return p


if __name__ == "__main__":
    B, S, H, VOCAB, FFN = 2, 8, 32, 50, 64
    EXP_HIDDEN, CLS_CLASSES = 64, 6

    key = jax.random.PRNGKey(0)
    kp, kid = jax.random.split(key)
    params = init_params(kp, VOCAB, S, H, FFN, EXP_HIDDEN, CLS_CLASSES)

    input_ids = jax.random.randint(kid, (B, S), 0, VOCAB, dtype=jnp.int32)
    attention_mask = jnp.array([[1, 1, 1, 1, 1, 1, 1, 1],
                                [1, 1, 1, 1, 1, 0, 0, 0]], dtype=jnp.float32)

    cls_out, attn_w, exp_out = facbert_forward(input_ids, attention_mask, params)
    jax.block_until_ready((cls_out, attn_w, exp_out))

    assert cls_out.shape == (B, CLS_CLASSES)
    assert attn_w.shape == (B, S)
    assert exp_out.shape == (B, S)
    print("KERNEL_OK")
</pallas_src>

<mosaic_0001>
module attributes {stable_mosaic.version = 11 : i64} {
  func.func @_encoder_cls_kernel(%arg0: i32, %arg1: memref<2x8x32xf32, #tpu.memory_space<vmem>>, %arg2: memref<2x8xf32, #tpu.memory_space<vmem>>, %arg3: memref<32x32xbf16, #tpu.memory_space<vmem>>, %arg4: memref<1x32xf32, #tpu.memory_space<vmem>>, %arg5: memref<32x32xbf16, #tpu.memory_space<vmem>>, %arg6: memref<1x32xf32, #tpu.memory_space<vmem>>, %arg7: memref<32x32xbf16, #tpu.memory_space<vmem>>, %arg8: memref<1x32xf32, #tpu.memory_space<vmem>>, %arg9: memref<32x32xbf16, #tpu.memory_space<vmem>>, %arg10: memref<1x32xf32, #tpu.memory_space<vmem>>, %arg11: memref<1x32xf32, #tpu.memory_space<vmem>>, %arg12: memref<1x32xf32, #tpu.memory_space<vmem>>, %arg13: memref<32x64xbf16, #tpu.memory_space<vmem>>, %arg14: memref<1x64xf32, #tpu.memory_space<vmem>>, %arg15: memref<64x32xbf16, #tpu.memory_space<vmem>>, %arg16: memref<1x32xf32, #tpu.memory_space<vmem>>, %arg17: memref<1x32xf32, #tpu.memory_space<vmem>>, %arg18: memref<1x32xf32, #tpu.memory_space<vmem>>, %arg19: memref<32x32xbf16, #tpu.memory_space<vmem>>, %arg20: memref<1x32xf32, #tpu.memory_space<vmem>>, %arg21: memref<32x6xbf16, #tpu.memory_space<vmem>>, %arg22: memref<1x6xf32, #tpu.memory_space<vmem>>, %arg23: memref<32x192xbf16, #tpu.memory_space<vmem>>, %arg24: memref<1x192xf32, #tpu.memory_space<vmem>>, %arg25: memref<2x6xf32, #tpu.memory_space<vmem>>, %arg26: memref<2x8xf32, #tpu.memory_space<vmem>>, %arg27: memref<2x8x192xbf16, #tpu.memory_space<vmem>>) attributes {dimension_semantics = [#tpu.dimension_semantics<parallel>], iteration_bounds = array<i64: 1>, scalar_prefetch = 0 : i64, scratch_operands = 0 : i64, tpu.core_type = #tpu.core_type<tc>, window_params = [{transform_indices = @transform_0, window_bounds = array<i64: 2, 8, 32>}, {transform_indices = @transform_1, window_bounds = array<i64: 2, 8>}, {pipeline_mode = #tpu.pipeline_mode<synchronous>, transform_indices = @transform_2, window_bounds = array<i64: 32, 32>}, {pipeline_mode = #tpu.pipeline_mode<synchronous>, transform_indices = @transform_3, window_bounds = array<i64: 1, 32>}, {pipeline_mode = #tpu.pipeline_mode<synchronous>, transform_indices = @transform_4, window_bounds = array<i64: 32, 32>}, {pipeline_mode = #tpu.pipeline_mode<synchronous>, transform_indices = @transform_5, window_bounds = array<i64: 1, 32>}, {pipeline_mode = #tpu.pipeline_mode<synchronous>, transform_indices = @transform_6, window_bounds = array<i64: 32, 32>}, {pipeline_mode = #tpu.pipeline_mode<synchronous>, transform_indices = @transform_7, window_bounds = array<i64: 1, 32>}, {pipeline_mode = #tpu.pipeline_mode<synchronous>, transform_indices = @transform_8, window_bounds = array<i64: 32, 32>}, {pipeline_mode = #tpu.pipeline_mode<synchronous>, transform_indices = @transform_9, window_bounds = array<i64: 1, 32>}, {pipeline_mode = #tpu.pipeline_mode<synchronous>, transform_indices = @transform_10, window_bounds = array<i64: 1, 32>}, {pipeline_mode = #tpu.pipeline_mode<synchronous>, transform_indices = @transform_11, window_bounds = array<i64: 1, 32>}, {pipeline_mode = #tpu.pipeline_mode<synchronous>, transform_indices = @transform_12, window_bounds = array<i64: 32, 64>}, {pipeline_mode = #tpu.pipeline_mode<synchronous>, transform_indices = @transform_13, window_bounds = array<i64: 1, 64>}, {pipeline_mode = #tpu.pipeline_mode<synchronous>, transform_indices = @transform_14, window_bounds = array<i64: 64, 32>}, {pipeline_mode = #tpu.pipeline_mode<synchronous>, transform_indices = @transform_15, window_bounds = array<i64: 1, 32>}, {pipeline_mode = #tpu.pipeline_mode<synchronous>, transform_indices = @transform_16, window_bounds = array<i64: 1, 32>}, {pipeline_mode = #tpu.pipeline_mode<synchronous>, transform_indices = @transform_17, window_bounds = array<i64: 1, 32>}, {pipeline_mode = #tpu.pipeline_mode<synchronous>, transform_indices = @transform_18, window_bounds = array<i64: 32, 32>}, {pipeline_mode = #tpu.pipeline_mode<synchronous>, transform_indices = @transform_19, window_bounds = array<i64: 1, 32>}, {pipeline_mode = #tpu.pipeline_mode<synchronous>, transform_indices = @transform_20, window_bounds = array<i64: 32, 6>}, {pipeline_mode = #tpu.pipeline_mode<synchronous>, transform_indices = @transform_21, window_bounds = array<i64: 1, 6>}, {pipeline_mode = #tpu.pipeline_mode<synchronous>, transform_indices = @transform_22, window_bounds = array<i64: 32, 192>}, {pipeline_mode = #tpu.pipeline_mode<synchronous>, transform_indices = @transform_23, window_bounds = array<i64: 1, 192>}, {transform_indices = @transform_24, window_bounds = array<i64: 2, 6>}, {transform_indices = @transform_25, window_bounds = array<i64: 2, 8>}, {transform_indices = @transform_26, window_bounds = array<i64: 2, 8, 192>}]} {
    %c0 = arith.constant 0 : index
    %c0_0 = arith.constant 0 : index
    %c0_1 = arith.constant 0 : index
    %0 = vector.load %arg1[%c0, %c0_0, %c0_1] : memref<2x8x32xf32, #tpu.memory_space<vmem>>, vector<2x8x32xf32>
    %c0_2 = arith.constant 0 : index
    %c0_3 = arith.constant 0 : index
    %1 = vector.load %arg2[%c0_2, %c0_3] : memref<2x8xf32, #tpu.memory_space<vmem>>, vector<2x8xf32>
    %2 = vector.shape_cast %0 : vector<2x8x32xf32> to vector<16x32xf32>
    %3 = arith.truncf %2 : vector<16x32xf32> to vector<16x32xbf16>
    %c0_4 = arith.constant 0 : index
    %c0_5 = arith.constant 0 : index
    %4 = vector.load %arg3[%c0_4, %c0_5] : memref<32x32xbf16, #tpu.memory_space<vmem>>, vector<32x32xbf16>
    %cst = arith.constant dense<0.000000e+00> : vector<16x32xf32>
    %5 = tpu.matmul %3, %4, %cst {dimension_numbers = #tpu.dot_dimension_numbers<[1], [0], [0], [1], [0, 0, 1, 1], [], []>} : vector<16x32xbf16>, vector<32x32xbf16>, vector<16x32xf32> -> vector<16x32xf32>
    %c0_6 = arith.constant 0 : index
    %c0_7 = arith.constant 0 : index
    %6 = vector.load %arg4[%c0_6, %c0_7] : memref<1x32xf32, #tpu.memory_space<vmem>>, vector<1x32xf32>
    %7 = vector.broadcast %6 : vector<1x32xf32> to vector<16x32xf32>
    %8 = arith.addf %5, %7 : vector<16x32xf32>
    %c0_8 = arith.constant 0 : index
    %c0_9 = arith.constant 0 : index
    %9 = vector.load %arg5[%c0_8, %c0_9] : memref<32x32xbf16, #tpu.memory_space<vmem>>, vector<32x32xbf16>
    %cst_10 = arith.constant dense<0.000000e+00> : vector<16x32xf32>
    %10 = tpu.matmul %3, %9, %cst_10 {dimension_numbers = #tpu.dot_dimension_numbers<[1], [0], [0], [1], [0, 0, 1, 1], [], []>} : vector<16x32xbf16>, vector<32x32xbf16>, vector<16x32xf32> -> vector<16x32xf32>
    %c0_11 = arith.constant 0 : index
    %c0_12 = arith.constant 0 : index
    %11 = vector.load %arg6[%c0_11, %c0_12] : memref<1x32xf32, #tpu.memory_space<vmem>>, vector<1x32xf32>
    %12 = vector.broadcast %11 : vector<1x32xf32> to vector<16x32xf32>
    %13 = arith.addf %10, %12 : vector<16x32xf32>
    %c0_13 = arith.constant 0 : index
    %c0_14 = arith.constant 0 : index
    %14 = vector.load %arg7[%c0_13, %c0_14] : memref<32x32xbf16, #tpu.memory_space<vmem>>, vector<32x32xbf16>
    %cst_15 = arith.constant dense<0.000000e+00> : vector<16x32xf32>
    %15 = tpu.matmul %3, %14, %cst_15 {dimension_numbers = #tpu.dot_dimension_numbers<[1], [0], [0], [1], [0, 0, 1, 1], [], []>} : vector<16x32xbf16>, vector<32x32xbf16>, vector<16x32xf32> -> vector<16x32xf32>
    %c0_16 = arith.constant 0 : index
    %c0_17 = arith.constant 0 : index
    %16 = vector.load %arg8[%c0_16, %c0_17] : memref<1x32xf32, #tpu.memory_space<vmem>>, vector<1x32xf32>
    %17 = vector.broadcast %16 : vector<1x32xf32> to vector<16x32xf32>
    %18 = arith.addf %15, %17 : vector<16x32xf32>
    %19 = vector.shape_cast %8 : vector<16x32xf32> to vector<2x8x32xf32>
    %20 = arith.truncf %19 : vector<2x8x32xf32> to vector<2x8x32xbf16>
    %21 = vector.shape_cast %13 : vector<16x32xf32> to vector<2x8x32xf32>
    %22 = arith.truncf %21 : vector<2x8x32xf32> to vector<2x8x32xbf16>
    %23 = vector.shape_cast %18 : vector<16x32xf32> to vector<2x8x32xf32>
    %24 = arith.truncf %23 : vector<2x8x32xf32> to vector<2x8x32xbf16>
    "tpu.trace_start"() <{level = 10 : i32, message = "bqd,bkd->bqk"}> : () -> ()
    %cst_18 = arith.constant dense<0.000000e+00> : vector<2x8x8xf32>
    %25 = tpu.matmul %20, %22, %cst_18 {dimension_numbers = #tpu.dot_dimension_numbers<[2], [2], [1], [1], [0, 0, 0, 1, 1, 1], [0], [0]>} : vector<2x8x32xbf16>, vector<2x8x32xbf16>, vector<2x8x8xf32> -> vector<2x8x8xf32>
    "tpu.trace_stop"() : () -> ()
    %cst_19 = arith.constant 0.176776692 : f32
    %26 = vector.broadcast %cst_19 : f32 to vector<2x8x8xf32>
    %27 = arith.mulf %25, %26 : vector<2x8x8xf32>
    %cst_20 = arith.constant 1.000000e+00 : f32
    %28 = vector.broadcast %cst_20 : f32 to vector<2x8xf32>
    %29 = arith.subf %28, %1 : vector<2x8xf32>
    %30 = vector.shape_cast %29 : vector<2x8xf32> to vector<2x1x8xf32>
    %cst_21 = arith.constant -1.000000e+09 : f32
    %31 = vector.broadcast %cst_21 : f32 to vector<2x1x8xf32>
    %32 = arith.mulf %30, %31 : vector<2x1x8xf32>
    %33 = vector.broadcast %32 : vector<2x1x8xf32> to vector<2x8x8xf32>
    %34 = arith.addf %27, %33 : vector<2x8x8xf32>
    %cst_22 = arith.constant dense<0xFF800000> : vector<2x8xf32>
    %35 = vector.multi_reduction <maximumf>, %34, %cst_22 [2] : vector<2x8x8xf32> to vector<2x8xf32>
    %36 = vector.shape_cast %35 : vector<2x8xf32> to vector<2x8x1xf32>
    %37 = vector.broadcast %36 : vector<2x8x1xf32> to vector<2x8x8xf32>
    %38 = arith.subf %34, %37 : vector<2x8x8xf32>
    %39 = math.exp %38 : vector<2x8x8xf32>
    %cst_23 = arith.constant dense<0.000000e+00> : vector<2x8xf32>
    %40 = vector.multi_reduction <add>, %39, %cst_23 [2] : vector<2x8x8xf32> to vector<2x8xf32>
    %41 = vector.shape_cast %40 : vector<2x8xf32> to vector<2x8x1xf32>
    %42 = tpu.reciprocal %41 {approx = true} : vector<2x8x1xf32> -> vector<2x8x1xf32>
    %43 = vector.broadcast %42 : vector<2x8x1xf32> to vector<2x8x8xf32>
    %44 = arith.mulf %39, %43 : vector<2x8x8xf32>
    %45 = arith.truncf %44 : vector<2x8x8xf32> to vector<2x8x8xbf16>
    "tpu.trace_start"() <{level = 10 : i32, message = "bqk,bkd->bqd"}> : () -> ()
    %cst_24 = arith.constant dense<0.000000e+00> : vector<2x8x32xf32>
    %46 = tpu.matmul %45, %24, %cst_24 {dimension_numbers = #tpu.dot_dimension_numbers<[2], [1], [1], [2], [0, 0, 0, 1, 1, 2], [0], [0]>} : vector<2x8x8xbf16>, vector<2x8x32xbf16>, vector<2x8x32xf32> -> vector<2x8x32xf32>
    "tpu.trace_stop"() : () -> ()
    %47 = vector.shape_cast %46 : vector<2x8x32xf32> to vector<16x32xf32>
    %48 = arith.truncf %47 : vector<16x32xf32> to vector<16x32xbf16>
    %c0_25 = arith.constant 0 : index
    %c0_26 = arith.constant 0 : index
    %49 = vector.load %arg9[%c0_25, %c0_26] : memref<32x32xbf16, #tpu.memory_space<vmem>>, vector<32x32xbf16>
    %cst_27 = arith.constant dense<0.000000e+00> : vector<16x32xf32>
    %50 = tpu.matmul %48, %49, %cst_27 {dimension_numbers = #tpu.dot_dimension_numbers<[1], [0], [0], [1], [0, 0, 1, 1], [], []>} : vector<16x32xbf16>, vector<32x32xbf16>, vector<16x32xf32> -> vector<16x32xf32>
    %c0_28 = arith.constant 0 : index
    %c0_29 = arith.constant 0 : index
    %51 = vector.load %arg10[%c0_28, %c0_29] : memref<1x32xf32, #tpu.memory_space<vmem>>, vector<1x32xf32>
    %52 = vector.broadcast %51 : vector<1x32xf32> to vector<16x32xf32>
    %53 = arith.addf %50, %52 : vector<16x32xf32>
    %54 = arith.addf %2, %53 : vector<16x32xf32>
    %cst_30 = arith.constant dense<0.000000e+00> : vector<16xf32>
    %55 = vector.multi_reduction <add>, %54, %cst_30 [1] : vector<16x32xf32> to vector<16xf32>
    %56 = vector.shape_cast %55 : vector<16xf32> to vector<16x1xf32>
    %cst_31 = arith.constant 3.200000e+01 : f32
    %57 = vector.broadcast %cst_31 : f32 to vector<16x1xf32>
    %58 = arith.divf %56, %57 : vector<16x1xf32>
    %59 = arith.mulf %54, %54 : vector<16x32xf32>
    %cst_32 = arith.constant dense<0.000000e+00> : vector<16xf32>
    %60 = vector.multi_reduction <add>, %59, %cst_32 [1] : vector<16x32xf32> to vector<16xf32>
    %61 = vector.shape_cast %60 : vector<16xf32> to vector<16x1xf32>
    %cst_33 = arith.constant 3.200000e+01 : f32
    %62 = vector.broadcast %cst_33 : f32 to vector<16x1xf32>
    %63 = arith.divf %61, %62 : vector<16x1xf32>
    %64 = vector.broadcast %58 : vector<16x1xf32> to vector<16x32xf32>
    %65 = arith.subf %54, %64 : vector<16x32xf32>
    %66 = arith.mulf %58, %58 : vector<16x1xf32>
    %67 = arith.subf %63, %66 : vector<16x1xf32>
    %cst_34 = arith.constant 9.99999974E-6 : f32
    %68 = vector.broadcast %cst_34 : f32 to vector<16x1xf32>
    %69 = arith.addf %67, %68 : vector<16x1xf32>
    %70 = math.rsqrt %69 : vector<16x1xf32>
    %71 = vector.broadcast %70 : vector<16x1xf32> to vector<16x32xf32>
    %72 = arith.mulf %65, %71 : vector<16x32xf32>
    %c0_35 = arith.constant 0 : index
    %c0_36 = arith.constant 0 : index
    %73 = vector.load %arg11[%c0_35, %c0_36] : memref<1x32xf32, #tpu.memory_space<vmem>>, vector<1x32xf32>
    %74 = vector.broadcast %73 : vector<1x32xf32> to vector<16x32xf32>
    %75 = arith.mulf %72, %74 : vector<16x32xf32>
    %c0_37 = arith.constant 0 : index
    %c0_38 = arith.constant 0 : index
    %76 = vector.load %arg12[%c0_37, %c0_38] : memref<1x32xf32, #tpu.memory_space<vmem>>, vector<1x32xf32>
    %77 = vector.broadcast %76 : vector<1x32xf32> to vector<16x32xf32>
    %78 = arith.addf %75, %77 : vector<16x32xf32>
    %79 = arith.truncf %78 : vector<16x32xf32> to vector<16x32xbf16>
    %c0_39 = arith.constant 0 : index
    %c0_40 = arith.constant 0 : index
    %80 = vector.load %arg13[%c0_39, %c0_40] : memref<32x64xbf16, #tpu.memory_space<vmem>>, vector<32x64xbf16>
    %cst_41 = arith.constant dense<0.000000e+00> : vector<16x64xf32>
    %81 = tpu.matmul %79, %80, %cst_41 {dimension_numbers = #tpu.dot_dimension_numbers<[1], [0], [0], [1], [0, 0, 1, 1], [], []>} : vector<16x32xbf16>, vector<32x64xbf16>, vector<16x64xf32> -> vector<16x64xf32>
    %c0_42 = arith.constant 0 : index
    %c0_43 = arith.constant 0 : index
    %82 = vector.load %arg14[%c0_42, %c0_43] : memref<1x64xf32, #tpu.memory_space<vmem>>, vector<1x64xf32>
    %83 = vector.broadcast %82 : vector<1x64xf32> to vector<16x64xf32>
    %84 = arith.addf %81, %83 : vector<16x64xf32>
    %cst_44 = arith.constant 5.000000e-01 : f32
    %85 = vector.broadcast %cst_44 : f32 to vector<16x64xf32>
    %86 = arith.mulf %85, %84 : vector<16x64xf32>
    %cst_45 = arith.constant 4.471500e-02 : f32
    %87 = vector.broadcast %cst_45 : f32 to vector<16x64xf32>
    %88 = arith.mulf %87, %84 : vector<16x64xf32>
    %89 = arith.mulf %88, %84 : vector<16x64xf32>
    %90 = arith.mulf %89, %84 : vector<16x64xf32>
    %91 = arith.addf %84, %90 : vector<16x64xf32>
    %cst_46 = arith.constant 0.797884583 : f32
    %92 = vector.broadcast %cst_46 : f32 to vector<16x64xf32>
    %93 = arith.mulf %92, %91 : vector<16x64xf32>
    %94 = math.tanh %93 : vector<16x64xf32>
    %cst_47 = arith.constant 1.000000e+00 : f32
    %95 = vector.broadcast %cst_47 : f32 to vector<16x64xf32>
    %96 = arith.addf %95, %94 : vector<16x64xf32>
    %97 = arith.mulf %86, %96 : vector<16x64xf32>
    %98 = arith.truncf %97 : vector<16x64xf32> to vector<16x64xbf16>
    %c0_48 = arith.constant 0 : index
    %c0_49 = arith.constant 0 : index
    %99 = vector.load %arg15[%c0_48, %c0_49] : memref<64x32xbf16, #tpu.memory_space<vmem>>, vector<64x32xbf16>
    %cst_50 = arith.constant dense<0.000000e+00> : vector<16x32xf32>
    %100 = tpu.matmul %98, %99, %cst_50 {dimension_numbers = #tpu.dot_dimension_numbers<[1], [0], [0], [1], [0, 0, 1, 1], [], []>} : vector<16x64xbf16>, vector<64x32xbf16>, vector<16x32xf32> -> vector<16x32xf32>
    %c0_51 = arith.constant 0 : index
    %c0_52 = arith.constant 0 : index
    %101 = vector.load %arg16[%c0_51, %c0_52] : memref<1x32xf32, #tpu.memory_space<vmem>>, vector<1x32xf32>
    %102 = vector.broadcast %101 : vector<1x32xf32> to vector<16x32xf32>
    %103 = arith.addf %100, %102 : vector<16x32xf32>
    %104 = arith.addf %78, %103 : vector<16x32xf32>
    %cst_53 = arith.constant dense<0.000000e+00> : vector<16xf32>
    %105 = vector.multi_reduction <add>, %104, %cst_53 [1] : vector<16x32xf32> to vector<16xf32>
    %106 = vector.shape_cast %105 : vector<16xf32> to vector<16x1xf32>
    %cst_54 = arith.constant 3.200000e+01 : f32
    %107 = vector.broadcast %cst_54 : f32 to vector<16x1xf32>
    %108 = arith.divf %106, %107 : vector<16x1xf32>
    %109 = arith.mulf %104, %104 : vector<16x32xf32>
    %cst_55 = arith.constant dense<0.000000e+00> : vector<16xf32>
    %110 = vector.multi_reduction <add>, %109, %cst_55 [1] : vector<16x32xf32> to vector<16xf32>
    %111 = vector.shape_cast %110 : vector<16xf32> to vector<16x1xf32>
    %cst_56 = arith.constant 3.200000e+01 : f32
    %112 = vector.broadcast %cst_56 : f32 to vector<16x1xf32>
    %113 = arith.divf %111, %112 : vector<16x1xf32>
    %114 = vector.broadcast %108 : vector<16x1xf32> to vector<16x32xf32>
    %115 = arith.subf %104, %114 : vector<16x32xf32>
    %116 = arith.mulf %108, %108 : vector<16x1xf32>
    %117 = arith.subf %113, %116 : vector<16x1xf32>
    %cst_57 = arith.constant 9.99999974E-6 : f32
    %118 = vector.broadcast %cst_57 : f32 to vector<16x1xf32>
    %119 = arith.addf %117, %118 : vector<16x1xf32>
    %120 = math.rsqrt %119 : vector<16x1xf32>
    %121 = vector.broadcast %120 : vector<16x1xf32> to vector<16x32xf32>
    %122 = arith.mulf %115, %121 : vector<16x32xf32>
    %c0_58 = arith.constant 0 : index
    %c0_59 = arith.constant 0 : index
    %123 = vector.load %arg17[%c0_58, %c0_59] : memref<1x32xf32, #tpu.memory_space<vmem>>, vector<1x32xf32>
    %124 = vector.broadcast %123 : vector<1x32xf32> to vector<16x32xf32>
    %125 = arith.mulf %122, %124 : vector<16x32xf32>
    %c0_60 = arith.constant 0 : index
    %c0_61 = arith.constant 0 : index
    %126 = vector.load %arg18[%c0_60, %c0_61] : memref<1x32xf32, #tpu.memory_space<vmem>>, vector<1x32xf32>
    %127 = vector.broadcast %126 : vector<1x32xf32> to vector<16x32xf32>
    %128 = arith.addf %125, %127 : vector<16x32xf32>
    %129 = arith.truncf %128 : vector<16x32xf32> to vector<16x32xbf16>
    %130 = vector.shape_cast %128 : vector<16x32xf32> to vector<2x8x32xf32>
    %c0_62 = arith.constant 0 : index
    %c0_63 = arith.constant 0 : index
    %131 = vector.load %arg19[%c0_62, %c0_63] : memref<32x32xbf16, #tpu.memory_space<vmem>>, vector<32x32xbf16>
    %cst_64 = arith.constant dense<0.000000e+00> : vector<16x32xf32>
    %132 = tpu.matmul %129, %131, %cst_64 {dimension_numbers = #tpu.dot_dimension_numbers<[1], [0], [0], [1], [0, 0, 1, 1], [], []>} : vector<16x32xbf16>, vector<32x32xbf16>, vector<16x32xf32> -> vector<16x32xf32>
    %133 = math.tanh %132 : vector<16x32xf32>
    %134 = vector.shape_cast %133 : vector<16x32xf32> to vector<2x8x32xf32>
    %c0_65 = arith.constant 0 : index
    %c0_66 = arith.constant 0 : index
    %135 = vector.load %arg20[%c0_65, %c0_66] : memref<1x32xf32, #tpu.memory_space<vmem>>, vector<1x32xf32>
    %136 = vector.shape_cast %135 : vector<1x32xf32> to vector<1x1x32xf32>
    %137 = vector.broadcast %136 : vector<1x1x32xf32> to vector<2x8x32xf32>
    %138 = arith.mulf %134, %137 : vector<2x8x32xf32>
    %cst_67 = arith.constant dense<0.000000e+00> : vector<2x8xf32>
    %139 = vector.multi_reduction <add>, %138, %cst_67 [2] : vector<2x8x32xf32> to vector<2x8xf32>
    %cst_68 = arith.constant 0.000000e+00 : f32
    %140 = vector.broadcast %cst_68 : f32 to vector<2x8xf32>
    %141 = arith.cmpf ogt, %1, %140 : vector<2x8xf32>
    %cst_69 = arith.constant -1.000000e+30 : f32
    %142 = vector.broadcast %cst_69 : f32 to vector<2x8xf32>
    %143 = arith.select %141, %139, %142 : vector<2x8xi1>, vector<2x8xf32>
    %cst_70 = arith.constant dense<0xFF800000> : vector<2xf32>
    %144 = vector.multi_reduction <maximumf>, %143, %cst_70 [1] : vector<2x8xf32> to vector<2xf32>
    %145 = vector.shape_cast %144 : vector<2xf32> to vector<2x1xf32>
    %146 = vector.broadcast %145 : vector<2x1xf32> to vector<2x8xf32>
    %147 = arith.subf %143, %146 : vector<2x8xf32>
    %148 = math.exp %147 : vector<2x8xf32>
    %cst_71 = arith.constant dense<0.000000e+00> : vector<2xf32>
    %149 = vector.multi_reduction <add>, %148, %cst_71 [1] : vector<2x8xf32> to vector<2xf32>
    %150 = vector.shape_cast %149 : vector<2xf32> to vector<2x1xf32>
    %151 = tpu.reciprocal %150 {approx = true} : vector<2x1xf32> -> vector<2x1xf32>
    %152 = vector.broadcast %151 : vector<2x1xf32> to vector<2x8xf32>
    %153 = arith.mulf %148, %152 : vector<2x8xf32>
    %154 = vector.shape_cast %153 : vector<2x8xf32> to vector<2x8x1xf32>
    %155 = vector.broadcast %154 : vector<2x8x1xf32> to vector<2x8x32xf32>
    %156 = arith.mulf %155, %130 : vector<2x8x32xf32>
    %cst_72 = arith.constant dense<0.000000e+00> : vector<2x32xf32>
    %157 = vector.multi_reduction <add>, %156, %cst_72 [1] : vector<2x8x32xf32> to vector<2x32xf32>
    %158 = arith.truncf %157 : vector<2x32xf32> to vector<2x32xbf16>
    %c0_73 = arith.constant 0 : index
    %c0_74 = arith.constant 0 : index
    %159 = vector.load %arg21[%c0_73, %c0_74] : memref<32x6xbf16, #tpu.memory_space<vmem>>, vector<32x6xbf16>
    %cst_75 = arith.constant dense<0.000000e+00> : vector<2x6xf32>
    %160 = tpu.matmul %158, %159, %cst_75 {dimension_numbers = #tpu.dot_dimension_numbers<[1], [0], [0], [1], [0, 0, 1, 1], [], []>} : vector<2x32xbf16>, vector<32x6xbf16>, vector<2x6xf32> -> vector<2x6xf32>
    %c0_76 = arith.constant 0 : index
    %c0_77 = arith.constant 0 : index
    %161 = vector.load %arg22[%c0_76, %c0_77] : memref<1x6xf32, #tpu.memory_space<vmem>>, vector<1x6xf32>
    %162 = vector.broadcast %161 : vector<1x6xf32> to vector<2x6xf32>
    %163 = arith.addf %160, %162 : vector<2x6xf32>
    %c0_78 = arith.constant 0 : index
    %c0_79 = arith.constant 0 : index
    %164 = vector.load %arg25[%c0_78, %c0_79] : memref<2x6xf32, #tpu.memory_space<vmem>>, vector<2x6xf32>
    tpu.vector_store %arg25[%c0_78, %c0_79], %163 {strides = array<i32>} : memref<2x6xf32, #tpu.memory_space<vmem>>, vector<2x6xf32>,
    %c0_80 = arith.constant 0 : index
    %c0_81 = arith.constant 0 : index
    %165 = vector.load %arg26[%c0_80, %c0_81] : memref<2x8xf32, #tpu.memory_space<vmem>>, vector<2x8xf32>
    tpu.vector_store %arg26[%c0_80, %c0_81], %153 {strides = array<i32>} : memref<2x8xf32, #tpu.memory_space<vmem>>, vector<2x8xf32>,
    %c0_82 = arith.constant 0 : index
    %c0_83 = arith.constant 0 : index
    %166 = vector.load %arg23[%c0_82, %c0_83] : memref<32x192xbf16, #tpu.memory_space<vmem>>, vector<32x192xbf16>
    %cst_84 = arith.constant dense<0.000000e+00> : vector<16x192xf32>
    %167 = tpu.matmul %129, %166, %cst_84 {dimension_numbers = #tpu.dot_dimension_numbers<[1], [0], [0], [1], [0, 0, 1, 1], [], []>} : vector<16x32xbf16>, vector<32x192xbf16>, vector<16x192xf32> -> vector<16x192xf32>
    %c0_85 = arith.constant 0 : index
    %c0_86 = arith.constant 0 : index
    %168 = vector.load %arg24[%c0_85, %c0_86] : memref<1x192xf32, #tpu.memory_space<vmem>>, vector<1x192xf32>
    %169 = vector.broadcast %168 : vector<1x192xf32> to vector<16x192xf32>
    %170 = arith.addf %167, %169 : vector<16x192xf32>
    %171 = vector.shape_cast %170 : vector<16x192xf32> to vector<2x8x192xf32>
    %172 = arith.truncf %171 : vector<2x8x192xf32> to vector<2x8x192xbf16>
    %c0_87 = arith.constant 0 : index
    %c0_88 = arith.constant 0 : index
    %c0_89 = arith.constant 0 : index
    %173 = vector.load %arg27[%c0_87, %c0_88, %c0_89] : memref<2x8x192xbf16, #tpu.memory_space<vmem>>, vector<2x8x192xbf16>
    tpu.vector_store %arg27[%c0_87, %c0_88, %c0_89], %172 {strides = array<i32>} : memref<2x8x192xbf16, #tpu.memory_space<vmem>>, vector<2x8x192xbf16>,
    return
  }
  func.func @transform_0(%arg0: i32) -> (i32, i32, i32) {
    %c0_i32 = arith.constant 0 : i32
    %c0_i32_0 = arith.constant 0 : i32
    %c0_i32_1 = arith.constant 0 : i32
    return %arg0, %c0_i32, %c0_i32_0 : i32, i32, i32
  }
  func.func @transform_1(%arg0: i32) -> (i32, i32) {
    %c0_i32 = arith.constant 0 : i32
    %c0_i32_0 = arith.constant 0 : i32
    return %arg0, %c0_i32 : i32, i32
  }
  func.func @transform_2(%arg0: i32) -> (i32, i32) {
    %c0_i32 = arith.constant 0 : i32
    %c0_i32_0 = arith.constant 0 : i32
    %c0_i32_1 = arith.constant 0 : i32
    return %c0_i32, %c0_i32_0 : i32, i32
  }
  func.func @transform_3(%arg0: i32) -> (i32, i32) {
    %c0_i32 = arith.constant 0 : i32
    %c0_i32_0 = arith.constant 0 : i32
    %c0_i32_1 = arith.constant 0 : i32
    return %c0_i32, %c0_i32_0 : i32, i32
  }
  func.func @transform_4(%arg0: i32) -> (i32, i32) {
    %c0_i32 = arith.constant 0 : i32
    %c0_i32_0 = arith.constant 0 : i32
    %c0_i32_1 = arith.constant 0 : i32
    return %c0_i32, %c0_i32_0 : i32, i32
  }
  func.func @transform_5(%arg0: i32) -> (i32, i32) {
    %c0_i32 = arith.constant 0 : i32
    %c0_i32_0 = arith.constant 0 : i32
    %c0_i32_1 = arith.constant 0 : i32
    return %c0_i32, %c0_i32_0 : i32, i32
  }
  func.func @transform_6(%arg0: i32) -> (i32, i32) {
    %c0_i32 = arith.constant 0 : i32
    %c0_i32_0 = arith.constant 0 : i32
    %c0_i32_1 = arith.constant 0 : i32
    return %c0_i32, %c0_i32_0 : i32, i32
  }
  func.func @transform_7(%arg0: i32) -> (i32, i32) {
    %c0_i32 = arith.constant 0 : i32
    %c0_i32_0 = arith.constant 0 : i32
    %c0_i32_1 = arith.constant 0 : i32
    return %c0_i32, %c0_i32_0 : i32, i32
  }
  func.func @transform_8(%arg0: i32) -> (i32, i32) {
    %c0_i32 = arith.constant 0 : i32
    %c0_i32_0 = arith.constant 0 : i32
    %c0_i32_1 = arith.constant 0 : i32
    return %c0_i32, %c0_i32_0 : i32, i32
  }
  func.func @transform_9(%arg0: i32) -> (i32, i32) {
    %c0_i32 = arith.constant 0 : i32
    %c0_i32_0 = arith.constant 0 : i32
    %c0_i32_1 = arith.constant 0 : i32
    return %c0_i32, %c0_i32_0 : i32, i32
  }
  func.func @transform_10(%arg0: i32) -> (i32, i32) {
    %c0_i32 = arith.constant 0 : i32
    %c0_i32_0 = arith.constant 0 : i32
    %c0_i32_1 = arith.constant 0 : i32
    return %c0_i32, %c0_i32_0 : i32, i32
  }
  func.func @transform_11(%arg0: i32) -> (i32, i32) {
    %c0_i32 = arith.constant 0 : i32
    %c0_i32_0 = arith.constant 0 : i32
    %c0_i32_1 = arith.constant 0 : i32
    return %c0_i32, %c0_i32_0 : i32, i32
  }
  func.func @transform_12(%arg0: i32) -> (i32, i32) {
    %c0_i32 = arith.constant 0 : i32
    %c0_i32_0 = arith.constant 0 : i32
    %c0_i32_1 = arith.constant 0 : i32
    return %c0_i32, %c0_i32_0 : i32, i32
  }
  func.func @transform_13(%arg0: i32) -> (i32, i32) {
    %c0_i32 = arith.constant 0 : i32
    %c0_i32_0 = arith.constant 0 : i32
    %c0_i32_1 = arith.constant 0 : i32
    return %c0_i32, %c0_i32_0 : i32, i32
  }
  func.func @transform_14(%arg0: i32) -> (i32, i32) {
    %c0_i32 = arith.constant 0 : i32
    %c0_i32_0 = arith.constant 0 : i32
    %c0_i32_1 = arith.constant 0 : i32
    return %c0_i32, %c0_i32_0 : i32, i32
  }
  func.func @transform_15(%arg0: i32) -> (i32, i32) {
    %c0_i32 = arith.constant 0 : i32
    %c0_i32_0 = arith.constant 0 : i32
    %c0_i32_1 = arith.constant 0 : i32
    return %c0_i32, %c0_i32_0 : i32, i32
  }
  func.func @transform_16(%arg0: i32) -> (i32, i32) {
    %c0_i32 = arith.constant 0 : i32
    %c0_i32_0 = arith.constant 0 : i32
    %c0_i32_1 = arith.constant 0 : i32
    return %c0_i32, %c0_i32_0 : i32, i32
  }
  func.func @transform_17(%arg0: i32) -> (i32, i32) {
    %c0_i32 = arith.constant 0 : i32
    %c0_i32_0 = arith.constant 0 : i32
    %c0_i32_1 = arith.constant 0 : i32
    return %c0_i32, %c0_i32_0 : i32, i32
  }
  func.func @transform_18(%arg0: i32) -> (i32, i32) {
    %c0_i32 = arith.constant 0 : i32
    %c0_i32_0 = arith.constant 0 : i32
    %c0_i32_1 = arith.constant 0 : i32
    return %c0_i32, %c0_i32_0 : i32, i32
  }
  func.func @transform_19(%arg0: i32) -> (i32, i32) {
    %c0_i32 = arith.constant 0 : i32
    %c0_i32_0 = arith.constant 0 : i32
    %c0_i32_1 = arith.constant 0 : i32
    return %c0_i32, %c0_i32_0 : i32, i32
  }
  func.func @transform_20(%arg0: i32) -> (i32, i32) {
    %c0_i32 = arith.constant 0 : i32
    %c0_i32_0 = arith.constant 0 : i32
    %c0_i32_1 = arith.constant 0 : i32
    return %c0_i32, %c0_i32_0 : i32, i32
  }
  func.func @transform_21(%arg0: i32) -> (i32, i32) {
    %c0_i32 = arith.constant 0 : i32
    %c0_i32_0 = arith.constant 0 : i32
    %c0_i32_1 = arith.constant 0 : i32
    return %c0_i32, %c0_i32_0 : i32, i32
  }
  func.func @transform_22(%arg0: i32) -> (i32, i32) {
    %c0_i32 = arith.constant 0 : i32
    %c0_i32_0 = arith.constant 0 : i32
    %c0_i32_1 = arith.constant 0 : i32
    return %c0_i32, %c0_i32_0 : i32, i32
  }
  func.func @transform_23(%arg0: i32) -> (i32, i32) {
    %c0_i32 = arith.constant 0 : i32
    %c0_i32_0 = arith.constant 0 : i32
    %c0_i32_1 = arith.constant 0 : i32
    return %c0_i32, %c0_i32_0 : i32, i32
  }
  func.func @transform_24(%arg0: i32) -> (i32, i32) {
    %c0_i32 = arith.constant 0 : i32
    %c0_i32_0 = arith.constant 0 : i32
    return %arg0, %c0_i32 : i32, i32
  }
  func.func @transform_25(%arg0: i32) -> (i32, i32) {
    %c0_i32 = arith.constant 0 : i32
    %c0_i32_0 = arith.constant 0 : i32
    return %arg0, %c0_i32 : i32, i32
  }
  func.func @transform_26(%arg0: i32) -> (i32, i32, i32) {
    %c0_i32 = arith.constant 0 : i32
    %c0_i32_0 = arith.constant 0 : i32
    %c0_i32_1 = arith.constant 0 : i32
    return %arg0, %c0_i32, %c0_i32_0 : i32, i32, i32
  }
}

</mosaic_0001>

<bundles_post_ra>
// kernel: tpu_custom_call.1
= control target key start
LH: loop header
LB: loop body
LE: loop exit
PB: predicated region body
PF: predicated region fallthrough
CT: control target
= control target key end

     0   :  { %s1732_s0 = inlined_call_operand.vmem [shape: f32[2,8,32], index: 0, kind: input, shape index: {}]   ;;  %s1733_s1 = inlined_call_operand.vmem [shape: f32[2,8], index: 1, kind: input, shape index: {}]   ;;  %s1734_s2 = inlined_call_operand.hbm [shape: bf16[32,32], index: 2, kind: input, shape index: {}]   ;;  %s1735_s3 = inlined_call_operand.vmem [shape: f32[1,32], index: 3, kind: input, shape index: {}]   ;;  %s1736_s4 = inlined_call_operand.hbm [shape: bf16[32,32], index: 4, kind: input, shape index: {}]   ;;  %s1737_s5 = inlined_call_operand.vmem [shape: f32[1,32], index: 5, kind: input, shape index: {}]   ;;  %s1738_s6 = inlined_call_operand.hbm [shape: bf16[32,32], index: 6, kind: input, shape index: {}]   ;;  %s1739_s7 = inlined_call_operand.vmem [shape: f32[1,32], index: 7, kind: input, shape index: {}]   ;;  %s1740_s8 = inlined_call_operand.hbm [shape: bf16[32,32], index: 8, kind: input, shape index: {}]   ;;  %s1741_s9 = inlined_call_operand.vmem [shape: f32[1,32], index: 9, kind: input, shape index: {}]   ;;  %s1742_s10 = inlined_call_operand.vmem [shape: f32[1,32], index: 10, kind: input, shape index: {}]   ;;  %s1743_s11 = inlined_call_operand.vmem [shape: f32[1,32], index: 11, kind: input, shape index: {}]   ;;  %s1744_s12 = inlined_call_operand.hbm [shape: bf16[32,64], index: 12, kind: input, shape index: {}]   ;;  %s1745_s13 = inlined_call_operand.vmem [shape: f32[1,64], index: 13, kind: input, shape index: {}]   ;;  %s1746_s14 = inlined_call_operand.vmem [shape: bf16[64,32], index: 14, kind: input, shape index: {}]   ;;  %s1747_s15 = inlined_call_operand.vmem [shape: f32[1,32], index: 15, kind: input, shape index: {}]   ;;  %s1748_s16 = inlined_call_operand.vmem [shape: f32[1,32], index: 16, kind: input, shape index: {}]   ;;  %s1749_s17 = inlined_call_operand.vmem [shape: f32[1,32], index: 17, kind: input, shape index: {}]   ;;  %s1750_s18 = inlined_call_operand.hbm [shape: bf16[32,32], index: 18, kind: input, shape index: {}]   ;;  %s1751_s19 = inlined_call_operand.vmem [shape: f32[1,32], index: 19, kind: input, shape index: {}]   ;;  %s1752_s20 = inlined_call_operand.vmem [shape: bf16[32,6], index: 20, kind: input, shape index: {}]   ;;  %s1753_s21 = inlined_call_operand.vmem [shape: f32[1,6], index: 21, kind: input, shape index: {}]   ;;  %s1754_s22 = inlined_call_operand.vmem [shape: bf16[32,192], index: 22, kind: input, shape index: {}]   ;;  %s1755_s23 = inlined_call_operand.vmem [shape: f32[1,192], index: 23, kind: input, shape index: {}]   ;;  %s1756_s24 = inlined_call_operand.hbm [shape: f32[2,6], index: 24, kind: output, shape index: {0}]   ;;  %s1757_s25 = inlined_call_operand.hbm [shape: f32[2,8], index: 25, kind: output, shape index: {1}]   ;;  %s1758_s26 = inlined_call_operand.hbm [shape: bf16[2,8,192], index: 26, kind: output, shape index: {2}]  }
   0x1   :  { %1760 = sst [smem:[#allocation23_spill]] %s1732_s0 }
   0x2   :  { %1761 = sst [smem:[#allocation24_spill]] %s1733_s1 }
   0x3   :  { %1762 = sst [smem:[#allocation25_spill]] %s1734_s2 }
   0x4   :  { %1763 = sst [smem:[#allocation26_spill]] %s1735_s3 }
   0x5   :  { %1764 = sst [smem:[#allocation27_spill]] %s1736_s4 }
   0x6   :  { %1765 = sst [smem:[#allocation28_spill]] %s1737_s5 }
   0x7   :  { %1766 = sst [smem:[#allocation29_spill]] %s1738_s6 }
   0x8   :  { %1767 = sst [smem:[#allocation30_spill]] %s1739_s7 }
   0x9   :  { %1768 = sst [smem:[#allocation31_spill]] %s1740_s8 }
   0xa   :  { %1769 = sst [smem:[#allocation32_spill]] %s1741_s9 }
   0xb   :  { %1770 = sst [smem:[#allocation33_spill]] %s1742_s10 }
   0xc   :  { %1771 = sst [smem:[#allocation34_spill]] %s1753_s21 }
   0xd   :  { %1772 = sst [smem:[#allocation35_spill]] %s1756_s24 }
   0xe   :  { %32 = vsyncpa [#allocation3], 0 }
   0xf   :  { %33 = vsyncpa [#allocation6], 0 }
  0x10   :  { %34 = vsyncpa [#allocation9], 0 }
  0x11   :  { %35 = vsyncpa [#allocation12], 0 }
  0x12   :  { %36 = vsyncpa [#allocation4], 0 }
  0x13   :  { %37 = vsyncpa [#allocation15], 0  ;;  %s1773_s7 = sld [smem:[#allocation27_spill]]  ;;  %s1367_s8 = smov [#allocation5]  }
  0x14   :  { %s63_s4 = sshll.u32 %s1367_s8, 4  ;;  %s1774_s9 = sld [smem:[#allocation31_spill]]  ;;  %s64_s4 = int_to_ptr.vmem [resolvable:$true] %s63_s4 }
  0x15   :  { %s1368_s2 = smov 64   ;;  %s1369_s5 = smov 4  }
  0x16   :  { %s1370_s10 = smov [#allocation8]   ;;  %s1775_s3 = sld [smem:[#allocation25_spill]] }
  0x17   :  { %s93_s6 = sshll.u32 %s1370_s10, 4  ;;  %s1776_s0 = sld [smem:[#allocation29_spill]]  ;;  %s94_s6 = int_to_ptr.vmem [resolvable:$true] %s93_s6 }
  0x18   :  { %s1371_s24 = smov [#allocation2]   ;;  %s110_s27 = sshll.u32 %s1744_s12, 4  ;;  %s111_s27 = int_to_ptr.hbm [resolvable:$true] %s110_s27 }
  0x19   :  { %s61_s28 = sshll.u32 %s1773_s7, 4  ;;  %s48_s21 = sshll.u32 %s1371_s24, 4  ;;  %s62_s28 = int_to_ptr.hbm [resolvable:$true] %s61_s28  ;;  %s49_s21 = int_to_ptr.vmem [resolvable:$true] %s48_s21 }
  0x1a   :  { %s91_s30 = sshll.u32 %s1774_s9, 4  ;;  %s92_s30 = int_to_ptr.hbm [resolvable:$true] %s91_s30 }
  0x1b   :  { %69 = dma.hbm_to_vmem [thread:$0]  %s62_s28, 256, %s64_s4, [#allocation6], %s1368_s2, %s1368_s2, %s1369_s5  }
  0x1c   :  { %s46_s7 = sshll.u32 %s1775_s3, 4  ;;  %s1372_s28 = smov [#allocation7]   ;;  %s47_s7 = int_to_ptr.hbm [resolvable:$true] %s46_s7 }
  0x1d   :  { %99 = dma.hbm_to_vmem [thread:$0]  %s92_s30, 256, %s94_s6, [#allocation9], %s1368_s2, %s1368_s2, %s1369_s5  }
  0x1e   :  { %s76_s9 = sshll.u32 %s1776_s0, 4  ;;  %s78_s4 = sshll.u32 %s1372_s28, 4  ;;  %s77_s9 = int_to_ptr.hbm [resolvable:$true] %s76_s9  ;;  %s79_s4 = int_to_ptr.vmem [resolvable:$true] %s78_s4 }
  0x1f   :  { %54 = dma.hbm_to_vmem [thread:$0]  %s47_s7, 256, %s49_s21, [#allocation3], %s1368_s2, %s1368_s2, %s1369_s5  }
  0x20   :  { %84 = dma.hbm_to_vmem [thread:$0]  %s77_s9, 256, %s79_s4, [#allocation6], %s1368_s2, %s1368_s2, %s1369_s5  }
  0x21   :  { %s133_s6 = sshll.u32 %s1750_s18, 4  ;;  %s1373_s3 = smov [#allocation10]   ;;  %s134_s6 = int_to_ptr.hbm [resolvable:$true] %s133_s6 }
  0x22   :  { %s112_s8 = sshll.u32 %s1373_s3, 4  ;;  %s1374_s21 = smov [#allocation11]   ;;  %s113_s8 = int_to_ptr.vmem [resolvable:$true] %s112_s8 }
  0x23   :  { %118 = dma.hbm_to_vmem [thread:$0]  %s111_s27, 256, %s113_s8, [#allocation9], %s1368_s2, %s1368_s2, %s1369_s5  }
  0x24   :  { %s135_s12 = sshll.u32 %s1374_s21, 4  ;;  %s136_s12 = int_to_ptr.vmem [resolvable:$true] %s135_s12 }
  0x25   :  { %141 = dma.hbm_to_vmem [thread:$0]  %s134_s6, 256, %s136_s12, [#allocation12], %s1368_s2, %s1368_s2, %s1369_s5  }
  0x26   :  { %1355 = dma.done.wait [#allocation3], 256  }
  0x27   :  { %1356 = vsyncadd [#allocation3], 4294967040 }
  0x28   :  { %1357 = dma.done.wait [#allocation6], 512  }
  0x29   :  { %1358 = vsyncadd [#allocation6], 4294966784 }
  0x2a   :  { %1359 = dma.done.wait [#allocation9], 512  }
  0x2b   :  { %1360 = vsyncadd [#allocation9], 4294966784 }
  0x2c   :  { %1361 = dma.done.wait [#allocation12], 256  }
  0x2d   :  { %1362 = vsyncadd [#allocation12], 4294967040  ;;  %v1061_v0 = vld [vmem:[#allocation5 + $0x8] sm:$0xff]  ;;  %v1060_v1 = vld [vmem:[#allocation5] sm:$0xff]  ;;  %s1777_s29 = sld [smem:[#allocation23_spill]]  ;;  %vm201_vm0 = vcmask 261120  }
  0x2e   :  { %v1059_v4 = vld [vmem:[#allocation2 + $0x8] sm:$0xff]  ;;  %245 = vmatpush.bf16.msra.mxu1 %v1061_v0  ;;  %v1058_v5 = vld [vmem:[#allocation2] sm:$0xff]  ;;  %s1778_s28 = sld [smem:[#allocation28_spill]]  ;;  %vm347_vm1 = vcmask 64512   ;;  %vm375_vm2 = vcmask 1043456   ;;  %v1065_v61 = vld [vmem:[#allocation8 + $0x8] sm:$0xff] }
  0x2f   :  { %211 = vmatpush.bf16.msra.mxu0 %v1059_v4  ;;  %s1779_s1 = sld [smem:[#allocation26_spill]]  ;;  %v1063_v23 = vld [vmem:[#allocation7 + $0x8] sm:$0xff]  ;;  %v1062_v25 = vld [vmem:[#allocation7] sm:$0xff]  ;;  %vm611_vm10 = vcmask 523264   ;;  %s921_s21 = sshll.u32 %s1757_s25, 4  ;;  %s922_s21 = int_to_ptr.hbm [resolvable:$true] %s921_s21 }
  0x30   :  { %s1780_s24 = sld [smem:[#allocation24_spill]]  ;;  %279 = vmatpush.bf16.msra.mxu2 %v1063_v23  ;;  %s1377_s12 = smov [#allocation16]  }
  0x31   :  { %s1781_s8 = sld [smem:[#allocation30_spill]]  ;;  %s1378_s9 = smov 128  }
  0x32   :  { %246 = vmatpush.bf16.msra.mxu1 %v1060_v1  ;;  %s1782_s18 = sld [smem:[#allocation32_spill]]  ;;  %s1379_s2 = smov 8  }
  0x33   :  { %v1555_v2 = vld [vmem:[%s1777_s29] sm:$0xff]  ;;  %v1560_v3 = vld [vmem:[%s1777_s29 + $0x8] sm:$0xff]  ;;  %212 = vmatpush.bf16.msra.mxu0 %v1058_v5  ;;  %s1783_s0 = sld [smem:[#allocation33_spill]]  ;;  %s1380_s10 = smov [#allocation13]  }
  0x34   :  { %v180_v6 = vpack.c.bf16 %v1560_v3, %v1555_v2  ;;  %v1097_v7 = vld [vmem:[%s1778_s28] ss:$0 sm:$0xff]  ;;  %280 = vmatpush.bf16.msra.mxu2 %v1062_v25  ;;  %s1784_s4 = sld [smem:[#allocation34_spill]]  ;;  %s908_s25 = sshll.u32 %s1380_s10, 4  ;;  %s909_s25 = int_to_ptr.vmem [resolvable:$true] %s908_s25 }
  0x35   :  { %v1098_v10 = vld [vmem:[%s1779_s1] ss:$0 sm:$0xff]  ;;  %s1785_s27 = sld [smem:[#allocation35_spill]] }
  0x36   :  { %973 = vmatmul.msk.bf16.vlgmr.msra.gmra.mxu1 %vm201_vm0, %v180_v6  ;;  %964 = vmatmul.msk.bf16.vlgmr.msra.gmra.mxu0 %vm201_vm0, %v180_v6  ;;  %v1579_v24 = vld [vmem:[%s1780_s24] sm:$0x3] }
  0x37   :  { %v333_v26 = vsub.f32 1.0, %v1579_v24  ;;  %982 = vmatmul.msk.bf16.vlgmr.msra.gmra.mxu2 %vm201_vm0, %v180_v6  ;;  %v1099_v42 = vld [vmem:[%s1781_s8] ss:$0 sm:$0xff] }
  0x39   :  { %v335_v27 = vrot.slane %v333_v26, 1  ;;  %v337_v33 = vmul.f32 -1e+09, %v333_v26 }
  0x3b   :  { %v338_v28 = vmul.f32 -1e+09, %v335_v27  ;;  %v341_v37 = vperm.slane %v337_v33, 0 }
  0x3d   :  { %v342_v30 = vperm.slane %v338_v28, 0  ;;  %v1375_v28 = vmov 32.0  }
  0xb3   :  { %v248_v8 = vpop.f32.mrf.mxu1  ;;  %v214_v11 = vpop.f32.mrf.mxu0 }
  0xb4   :  { %v249_v9 = vadd.f32 %v1097_v7, %v248_v8  ;;  %v215_v14 = vadd.f32 %v1098_v10, %v214_v11  ;;  %v1064_v8 = vld [vmem:[#allocation8] sm:$0xff] }
  0xb6   :  { %v289_v12 = vpack.c.bf16 %v249_v9, %v249_v9  ;;  %v287_v16 = vpack.c.bf16 %v215_v14, %v215_v14  ;;  %v1100_v14 = vld [vmem:[%s1782_s18] ss:$0 sm:$0xff]  ;;  %s929_s18 = sshll.u32 %s1377_s12, 4  ;;  %s930_s18 = int_to_ptr.vmem [resolvable:$true] %s929_s18 }
  0xb8   :  { %v297_v13 = vsel %vm201_vm0, %v289_v12, 0 }
  0xb9   :  { %306 = vmatpush.bf16.xpose.msra.mxu3 %v297_v13 }
  0xba   :  { %v282_v45 = vpop.f32.mrf.mxu2 }
  0xbb   :  { %v250_v15 = vpop.f32.mrf.mxu1  ;;  %v216_v19 = vpop.f32.mrf.mxu0  ;;  %v283_v46 = vadd.f32 %v1099_v42, %v282_v45 }
  0xbc   :  { %v251_v17 = vadd.f32 %v1097_v7, %v250_v15  ;;  %v217_v21 = vadd.f32 %v1098_v10, %v216_v19 }
  0xbd   :  { %v291_v48 = vpack.c.bf16 %v283_v46, %v283_v46 }
  0xbe   :  { %v290_v18 = vpack.c.bf16 %v251_v17, %v251_v17  ;;  %v288_v22 = vpack.c.bf16 %v217_v21, %v217_v21 }
  0xbf   :  { %v377_v49 = vsel %vm375_vm2, %v291_v48, 0 }
  0xc0   :  { %983 = vmatmul.msk.bf16.vlgmr.msra.gmra.mxu3 %vm201_vm0, %v287_v16  ;;  %v316_v20 = vsel %vm201_vm0, %v290_v18, 0  ;;  %386 = vmatpush.bf16.msrb.mxu1 %v377_v49 }
  0xc1   :  { %325 = vmatpush.bf16.xpose.msrb.mxu0 %v316_v20  ;;  %441 = vmatpush.bf16.msrb.mxu3 %v1065_v61 }
  0xc2   :  { %v284_v52 = vpop.f32.mrf.mxu2 }
  0xc3   :  { %v285_v53 = vadd.f32 %v1099_v42, %v284_v52 }
  0xc5   :  { %v292_v57 = vpack.c.bf16 %v285_v53, %v285_v53  ;;  %442 = vmatpush.bf16.msrb.mxu3 %v1064_v8 }
  0xc7   :  { %v396_v58 = vsel %vm375_vm2, %v292_v57, 0 }
  0xc8   :  { %984 = vmatmul.msk.bf16.vlgmr.msrb.gmra.mxu0 %vm201_vm0, %v288_v22  ;;  %405 = vmatpush.bf16.msrb.mxu2 %v396_v58 }
 0x143   :  { %v308_v29 = vpop.f32.mrf.mxu3 }
 0x144   :  { %v331_v35 = vmul.f32 0.17677669, %v308_v29 }
 0x145   :  { %v327_v31 = vpop.f32.mrf.mxu0 }
 0x146   :  { %v332_v32 = vmul.f32 0.17677669, %v327_v31  ;;  %v345_v40 = vadd.f32 %v341_v37, %v331_v35 }
 0x148   :  { %v346_v34 = vadd.f32 %v342_v30, %v332_v32  ;;  %v348_v41 = vsel %vm347_vm1, %v345_v40, -inf }
 0x14a   :  { %v351_v36 = vsel %vm347_vm1, %v346_v34, -inf }
 0x14b   :  { %352 = vmax.xlane.f32.xlu0 %v351_v36  ;;  %v310_v38 = vpop.f32.mrf.mxu3 }
 0x14c   :  { %v1067_v38 = vld [vmem:[#allocation10 + $0x8] sm:$0xff] }
 0x14d   :  { %v329_v39 = vpop.f32.mrf.mxu0  ;;  %548 = vmatpush.bf16.msra.mxu0 %v1067_v38 }
 0x153   :  { %349 = vmax.xlane.f32.xlu0 %v348_v41 }
 0x1be   :  { %v353_v43 = vpop.xlane.xlu0 %352 }
 0x1bf   :  { %v355_v44 = vsub.f32 %v346_v34, %v353_v43 }
 0x1c1   :  { %v358_v47 = vmul.f32 1.442695, %v355_v44 }
 0x1c3   :  { %1109 = vpow2.f32 %v358_v47 }
 0x1c6   :  { %v350_v50 = vpop.xlane.xlu0 %349 }
 0x1c7   :  { %v354_v51 = vsub.f32 %v345_v40, %v350_v50  ;;  %v1066_v40 = vld [vmem:[#allocation10] sm:$0xff] }
 0x1c8   :  { %549 = vmatpush.bf16.msra.mxu0 %v1066_v40  ;;  %v1104_v40 = vld [vmem:[%s1747_s15] ss:$0 sm:$0xff] }
 0x1c9   :  { %v1110_v54 = vpop.eup %1109  ;;  %v356_v55 = vmul.f32 1.442695, %v354_v51 }
 0x1ca   :  { %v363_v56 = vsel %vm347_vm1, %v1110_v54, 0.0 }
 0x1cb   :  { %1111 = vpow2.f32 %v356_v55  ;;  %364 = vadd.xlane.f32.xlu1 %v363_v56 }
 0x1d1   :  { %v1112_v59 = vpop.eup %1111 }
 0x1d2   :  { %v360_v60 = vsel %vm347_vm1, %v1112_v59, 0.0 }
 0x1d3   :  { %361 = vadd.xlane.f32.xlu1 %v360_v60 }
 0x23e   :  { %v365_v62 = vpop.xlane.xlu1 %364 }
 0x23f   :  { %1113 = vrcp.f32 %v365_v62  ;;  %v1101_v62 = vld [vmem:[%s1783_s0] ss:$0 sm:$0xff]  ;;  %s931_s0 = sshll.u32 %s1758_s26, 4  ;;  %s932_s0 = int_to_ptr.hbm [resolvable:$true] %s931_s0 }
 0x245   :  { %v1114_v63 = vpop.eup %1113 }
 0x246   :  { %v369_v0 = vmul.f32 %v1114_v63, %v1110_v54  ;;  %v362_v1 = vpop.xlane.xlu1 %361 }
 0x247   :  { %1115 = vrcp.f32 %v362_v1 }
 0x248   :  { %v371_v4 = vpack.c.bf16 %v369_v0, %v369_v0  ;;  %1117 = vrcp.f32 %v1375_v28 }
 0x24a   :  { %986 = vmatmul.msk.bf16.vlgmr.msrb.gmra.mxu2 %vm347_vm1, %v371_v4 }
 0x24d   :  { %v1116_v5 = vpop.eup %1115 }
 0x24e   :  { %v368_v6 = vmul.f32 %v1116_v5, %v1112_v59 }
 0x250   :  { %v370_v7 = vpack.c.bf16 %v368_v6, %v368_v6 }
 0x252   :  { %985 = vmatmul.msk.bf16.vlgmr.msrb.gmra.mxu1 %vm347_vm1, %v370_v7  ;;  %v1102_v7 = vld [vmem:[%s1743_s11] ss:$0 sm:$0xff]  ;;  %s910_s11 = sshll.u32 %s1785_s27, 4  ;;  %s911_s11 = int_to_ptr.hbm [resolvable:$true] %s910_s11 }
 0x2cd   :  { %v407_v9 = vpop.f32.mrf.mxu2 }
 0x2cf   :  { %v388_v10 = vpop.f32.mrf.mxu1 }
 0x2d0   :  { %v411_v11 = vpack.c.bf16 %v407_v9, %v388_v10 }
 0x2d2   :  { %995 = vmatmul.msk.bf16.vlgmr.msrb.gmra.mxu3 %vm201_vm0, %v411_v11 }
 0x2d5   :  { %v409_v12 = vpop.f32.mrf.mxu2 }
 0x2d6   :  { %v1071_v12 = vld [vmem:[%s1746_s14 + $0x18] sm:$0xff] }
 0x2d7   :  { %v390_v13 = vpop.f32.mrf.mxu1  ;;  %619 = vmatpush.bf16.msra.mxu1 %v1071_v12 }
 0x2d8   :  { %v1070_v13 = vld [vmem:[%s1746_s14 + $0x10] sm:$0xff] }
 0x2db   :  { %620 = vmatpush.bf16.msra.mxu1 %v1070_v13 }
 0x355   :  { %v444_v15 = vpop.f32.mrf.mxu3 }
 0x356   :  { %v445_v16 = vadd.f32 %v1100_v14, %v444_v15  ;;  %v1068_v15 = vld [vmem:[%s1746_s14] sm:$0xff] }
 0x358   :  { %v449_v17 = vadd.f32 %v445_v16, %v1555_v2  ;;  %v1118_v2 = vpop.eup %1117  ;;  %v1103_v16 = vld [vmem:[%s1745_s13] ss:$0 sm:$0xff] }
 0x359   :  { %v458_v29 = vmul.f32 32.0, %v1118_v2  ;;  %vm462_vm3 = vweird.f32 %v1118_v2 }
 0x35a   :  { %v451_v18 = vsel %vm201_vm0, %v449_v17, 0.0  ;;  %v466_v19 = vmul.f32 %v449_v17, %v449_v17 }
 0x35b   :  { %452 = vadd.xlane.f32.xlu2 %v451_v18  ;;  %v459_v30 = vsub.f32 1.0, %v458_v29 }
 0x35c   :  { %v468_v20 = vsel %vm201_vm0, %v466_v19, 0.0 }
 0x35d   :  { %v446_v21 = vpop.f32.mrf.mxu3  ;;  %469 = vadd.xlane.f32.xlu0 %v468_v20  ;;  %v460_v31 = vmul.f32 %v1118_v2, %v459_v30 }
 0x35e   :  { %v447_v22 = vadd.f32 %v1100_v14, %v446_v21  ;;  %v1069_v14 = vld [vmem:[%s1746_s14 + $0x8] sm:$0xff] }
 0x35f   :  { %v461_v32 = vadd.f32 %v1118_v2, %v460_v31  ;;  %621 = vmatpush.bf16.msra.mxu1 %v1069_v14 }
 0x360   :  { %v450_v23 = vadd.f32 %v447_v22, %v1560_v3 }
 0x361   :  { %v1604_v33 = vsel %vm462_vm3, %v1118_v2, %v461_v32  ;;  %vm899_vm3 = vcmask 523268  }
 0x362   :  { %v454_v25 = vsel %vm201_vm0, %v450_v23, 0.0  ;;  %v467_v26 = vmul.f32 %v450_v23, %v450_v23 }
 0x363   :  { %455 = vadd.xlane.f32.xlu2 %v454_v25  ;;  %622 = vmatpush.bf16.msra.mxu1 %v1068_v15 }
 0x364   :  { %v471_v27 = vsel %vm201_vm0, %v467_v26, 0.0 }
 0x365   :  { %472 = vadd.xlane.f32.xlu1 %v471_v27 }
 0x3ce   :  { %v453_v34 = vpop.xlane.xlu2 %452 }
 0x3cf   :  { %v464_v3 = vmul.f32 %v1604_v33, %v453_v34 }
 0x3d0   :  { %v470_v35 = vpop.xlane.xlu0 %469 }
 0x3d1   :  { %v478_v36 = vmul.f32 %v464_v3, %v464_v3  ;;  %v474_v37 = vmul.f32 %v470_v35, %v1604_v33  ;;  %v476_v60 = vsub.f32 %v449_v17, %v464_v3 }
 0x3d3   :  { %v480_v39 = vsub.f32 %v474_v37, %v478_v36 }
 0x3d5   :  { %v482_v41 = vadd.f32 1e-05, %v480_v39 }
 0x3d6   :  { %v456_v42 = vpop.xlane.xlu2 %455 }
 0x3d7   :  { %1119 = vrsqrt.f32 %v482_v41  ;;  %v465_v43 = vmul.f32 %v1604_v33, %v456_v42  ;;  %vm490_vm5 = vweird.f32 %v482_v41 }
 0x3d8   :  { %v473_v44 = vpop.xlane.xlu1 %472 }
 0x3d9   :  { %v479_v45 = vmul.f32 %v465_v43, %v465_v43  ;;  %v475_v46 = vmul.f32 %v473_v44, %v1604_v33  ;;  %v477_v1 = vsub.f32 %v450_v23, %v465_v43 }
 0x3db   :  { %v481_v47 = vsub.f32 %v475_v46, %v479_v45 }
 0x3dd   :  { %v1120_v48 = vpop.eup %1119  ;;  %v483_v49 = vadd.f32 1e-05, %v481_v47 }
 0x3de   :  { %v485_v50 = vmul.f32 %v1120_v48, %v482_v41  ;;  %vm491_vm4 = vweird.f32 %v1120_v48 }
 0x3df   :  { %1121 = vrsqrt.f32 %v483_v49  ;;  %vm492_vm6 = vmor %vm490_vm5, %vm491_vm4  ;;  %vm500_vm8 = vweird.f32 %v483_v49  ;;  %vm739_vm5 = vcmp.gt.f32.partialorder %v1579_v24, 0.0 }
 0x3e0   :  { %v486_v51 = vmul.f32 %v1120_v48, %v485_v50  ;;  %vm900_vm4 = vmor %vm899_vm3, %vm375_vm2  ;;  %vm746_vm2 = vcmask 1041409  }
 0x3e2   :  { %v487_v52 = vmul.f32 0.5, %v486_v51 }
 0x3e4   :  { %v488_v53 = vsub.f32 1.5, %v487_v52 }
 0x3e5   :  { %v1122_v54 = vpop.eup %1121 }
 0x3e6   :  { %v489_v55 = vmul.f32 %v1120_v48, %v488_v53  ;;  %v495_v56 = vmul.f32 %v1122_v54, %v483_v49  ;;  %vm501_vm7 = vweird.f32 %v1122_v54 }
 0x3e7   :  { %vm502_vm9 = vmor %vm500_vm8, %vm501_vm7 }
 0x3e8   :  { %v496_v57 = vmul.f32 %v1122_v54, %v495_v56  ;;  %v493_v58 = vsel %vm492_vm6, %v1120_v48, %v489_v55  ;;  %v1050_v56 = vld [vmem:[%s1754_s22 + $0x10] sm:$0xf]  ;;  %vm750_vm6 = vcmask 58368  }
 0x3e9   :  { %v504_v63 = vmul.f32 %v493_v58, %v476_v60  ;;  %v1078_v58 = vld [vmem:[%s1754_s22 + $0x14] sm:$0xf] }
 0x3ea   :  { %v497_v59 = vmul.f32 0.5, %v496_v57  ;;  %v1079_v57 = vld [vmem:[%s1754_s22 + $0x14] sm:$0xf0] }
 0x3eb   :  { %v510_v5 = vmul.f32 %v1101_v62, %v504_v63  ;;  %v1052_v63 = vld [vmem:[%s1754_s22 + $0x18] sm:$0xf0] }
 0x3ec   :  { %v498_v61 = vsub.f32 1.5, %v497_v59 }
 0x3ed   :  { %v516_v9 = vadd.f32 %v1102_v7, %v510_v5  ;;  %v1042_v5 = vld [vmem:[%s1754_s22] sm:$0xf] }
 0x3ee   :  { %v499_v0 = vmul.f32 %v1122_v54, %v498_v61  ;;  %v1073_v61 = vld [vmem:[#allocation11 + $0x8] sm:$0xff] }
 0x3ef   :  { %717 = vmatpush.bf16.msra.mxu2 %v1073_v61 }
 0x3f0   :  { %v503_v4 = vsel %vm502_vm9, %v1122_v54, %v499_v0  ;;  %v1055_v0 = vor.u32 %v1078_v58, %v1052_v63 }
 0x3f1   :  { %v505_v6 = vmul.f32 %v503_v4, %v477_v1  ;;  %v1072_v4 = vld [vmem:[#allocation11] sm:$0xff] }
 0x3f2   :  { %889 = vmatpush.bf16.msrb.mxu1 %v1055_v0 }
 0x3f3   :  { %v511_v8 = vmul.f32 %v1101_v62, %v505_v6  ;;  %v1051_v62 = vor.u32 %v1079_v57, %v1050_v56  ;;  %v1077_v6 = vld [vmem:[%s1754_s22 + $0x4] sm:$0xf0]  ;;  %718 = vmatpush.bf16.msra.mxu2 %v1072_v4  ;;  %v1107_v56 = vld [vmem:[%s1751_s19] ss:$0 sm:$0xff] }
 0x3f5   :  { %v517_v10 = vadd.f32 %v1102_v7, %v511_v8  ;;  %875 = vmatpush.bf16.msrb.mxu0 %v1051_v62  ;;  %v1043_v7 = vor.u32 %v1077_v6, %v1042_v5  ;;  %v1076_v8 = vld [vmem:[%s1754_s22 + $0x4] sm:$0xf] }
 0x3f7   :  { %v518_v11 = vpack.c.bf16 %v517_v10, %v516_v9 }
 0x3f9   :  { %1004 = vmatmul.msk.bf16.vlgmr.msra.gmra.mxu0 %vm201_vm0, %v518_v11 }
 0x3fa   :  { %876 = vmatpush.bf16.msrb.mxu0 %v1043_v7 }
 0x476   :  { %v551_v17 = vpop.f32.mrf.mxu0 }
 0x477   :  { %v552_v18 = vadd.f32 %v1103_v16, %v551_v17 }
 0x479   :  { %v558_v19 = vmul.f32 0.044715, %v552_v18  ;;  %v556_v3 = vmul.f32 0.5, %v552_v18 }
 0x47b   :  { %v560_v20 = vmul.f32 %v558_v19, %v552_v18 }
 0x47d   :  { %v562_v21 = vmul.f32 %v560_v20, %v552_v18 }
 0x47e   :  { %v553_v22 = vpop.f32.mrf.mxu0 }
 0x47f   :  { %v564_v23 = vadd.f32 %v562_v21, %v552_v18  ;;  %v554_v25 = vadd.f32 %v1103_v16, %v553_v22 }
 0x481   :  { %v559_v26 = vmul.f32 0.044715, %v554_v25  ;;  %v566_v27 = vmul.f32 0.7978846, %v564_v23  ;;  %v557_v35 = vmul.f32 0.5, %v554_v25 }
 0x483   :  { %v561_v28 = vmul.f32 %v559_v26, %v554_v25  ;;  %1123 = vtanh.f32 %v566_v27 }
 0x485   :  { %v563_v2 = vmul.f32 %v561_v28, %v554_v25 }
 0x487   :  { %v565_v29 = vadd.f32 %v563_v2, %v554_v25 }
 0x489   :  { %v567_v30 = vmul.f32 0.7978846, %v565_v29  ;;  %v1124_v31 = vpop.eup %1123 }
 0x48a   :  { %v570_v32 = vadd.f32 1.0, %v1124_v31  ;;  %v1105_v31 = vld [vmem:[%s1748_s16] ss:$0 sm:$0xff] }
 0x48b   :  { %1125 = vtanh.f32 %v567_v30 }
 0x48c   :  { %v572_v37 = vmul.f32 %v570_v32, %v556_v3 }
 0x491   :  { %v1126_v34 = vpop.eup %1125 }
 0x492   :  { %v571_v36 = vadd.f32 1.0, %v1126_v34 }
 0x494   :  { %v573_v38 = vmul.f32 %v571_v36, %v557_v35 }
 0x496   :  { %v574_v39 = vpack.c.bf16 %v573_v38, %v572_v37  ;;  %v1106_v38 = vld [vmem:[%s1749_s17] ss:$0 sm:$0xff] }
 0x498   :  { %1021 = vmatmul.msk.bf16.vlgmr.msra.gmra.mxu1 %vm611_vm10, %v574_v39 }
 0x515   :  { %v624_v41 = vpop.f32.mrf.mxu1 }
 0x516   :  { %v625_v42 = vadd.f32 %v1104_v40, %v624_v41 }
 0x518   :  { %v1635_v43 = vadd.f32 %v625_v42, %v516_v9  ;;  %v1044_v9 = vld [vmem:[%s1754_s22 + $0x8] sm:$0xf0] }
 0x519   :  { %v1047_v11 = vor.u32 %v1076_v8, %v1044_v9 }
 0x51a   :  { %v631_v44 = vsel %vm201_vm0, %v1635_v43, 0.0  ;;  %v639_v45 = vmul.f32 %v1635_v43, %v1635_v43 }
 0x51b   :  { %632 = vadd.xlane.f32.xlu2 %v631_v44  ;;  %890 = vmatpush.bf16.msrb.mxu1 %v1047_v11 }
 0x51c   :  { %v641_v46 = vsel %vm201_vm0, %v639_v45, 0.0 }
 0x51d   :  { %v626_v47 = vpop.f32.mrf.mxu1  ;;  %642 = vadd.xlane.f32.xlu1 %v641_v46 }
 0x51e   :  { %v627_v48 = vadd.f32 %v1104_v40, %v626_v47 }
 0x520   :  { %v1642_v49 = vadd.f32 %v627_v48, %v517_v10 }
 0x522   :  { %v634_v50 = vsel %vm201_vm0, %v1642_v49, 0.0  ;;  %v640_v51 = vmul.f32 %v1642_v49, %v1642_v49 }
 0x523   :  { %635 = vadd.xlane.f32.xlu0 %v634_v50 }
 0x524   :  { %v644_v52 = vsel %vm201_vm0, %v640_v51, 0.0 }
 0x525   :  { %645 = vadd.xlane.f32.xlu2 %v644_v52 }
 0x58e   :  { %v633_v53 = vpop.xlane.xlu2 %632 }
 0x58f   :  { %v637_v54 = vmul.f32 %v633_v53, %v1604_v33 }
 0x590   :  { %v643_v55 = vpop.xlane.xlu1 %642 }
 0x591   :  { %v651_v59 = vmul.f32 %v637_v54, %v637_v54  ;;  %v647_v60 = vmul.f32 %v643_v55, %v1604_v33  ;;  %v649_v30 = vsub.f32 %v1635_v43, %v637_v54  ;;  %v843_v43 = vld [vmem:[%s1755_s23] sm:$0x3] }
 0x592   :  { %v845_v44 = vperm.slane %v843_v43, 0  ;;  %v846_v45 = vperm.slane %v843_v43, 1 }
 0x593   :  { %v653_v1 = vsub.f32 %v647_v60, %v651_v59 }
 0x595   :  { %v655_v10 = vadd.f32 1e-05, %v653_v1  ;;  %v742_v1 = vlaneseq }
 0x596   :  { %v636_v12 = vpop.xlane.xlu0 %635 }
 0x597   :  { %1127 = vrsqrt.f32 %v655_v10  ;;  %v638_v13 = vmul.f32 %v636_v12, %v1604_v33  ;;  %vm663_vm12 = vweird.f32 %v655_v10  ;;  %v743_v4 = vand.u32 127, %v742_v1 }
 0x598   :  { %v646_v14 = vpop.xlane.xlu2 %645 }
 0x599   :  { %v652_v15 = vmul.f32 %v638_v13, %v638_v13  ;;  %v648_v16 = vmul.f32 %v646_v14, %v1604_v33  ;;  %v650_v3 = vsub.f32 %v1642_v49, %v638_v13 }
 0x59b   :  { %v654_v17 = vsub.f32 %v648_v16, %v652_v15 }
 0x59d   :  { %v1128_v18 = vpop.eup %1127  ;;  %v656_v19 = vadd.f32 1e-05, %v654_v17  ;;  %v764_v17 = vshrl.u32 %v742_v1, 7 }
 0x59e   :  { %v658_v20 = vmul.f32 %v1128_v18, %v655_v10  ;;  %vm664_vm11 = vweird.f32 %v1128_v18 }
 0x59f   :  { %1129 = vrsqrt.f32 %v656_v19  ;;  %vm665_vm13 = vmor %vm663_vm12, %vm664_vm11  ;;  %vm673_vm15 = vweird.f32 %v656_v19  ;;  %1095 = vset.pattern.permute.xlu2 %v764_v17  ;;  %1094 = vset.pattern.permute.xlu1 %v764_v17 }
 0x5a0   :  { %v659_v21 = vmul.f32 %v1128_v18, %v658_v20  ;;  %1096 = vset.pattern.permute.xlu0 %v764_v17 }
 0x5a2   :  { %v660_v22 = vmul.f32 0.5, %v659_v21 }
 0x5a4   :  { %v661_v23 = vsub.f32 1.5, %v660_v22 }
 0x5a5   :  { %v1130_v25 = vpop.eup %1129 }
 0x5a6   :  { %v662_v26 = vmul.f32 %v1128_v18, %v661_v23  ;;  %v668_v27 = vmul.f32 %v1130_v25, %v656_v19  ;;  %vm674_vm14 = vweird.f32 %v1130_v25 }
 0x5a7   :  { %vm675_vm1 = vmor %vm673_vm15, %vm674_vm14 }
 0x5a8   :  { %v669_v28 = vmul.f32 %v1130_v25, %v668_v27  ;;  %v666_v2 = vsel %vm665_vm13, %v1128_v18, %v662_v26  ;;  %v1074_v26 = vld [vmem:[%s1752_s20] sm:$0xff] }
 0x5a9   :  { %v677_v32 = vmul.f32 %v666_v2, %v649_v30 }
 0x5aa   :  { %v670_v29 = vmul.f32 0.5, %v669_v28 }
 0x5ab   :  { %v683_v36 = vmul.f32 %v1105_v31, %v677_v32 }
 0x5ac   :  { %v671_v33 = vsub.f32 1.5, %v670_v29 }
 0x5ad   :  { %v1685_v40 = vadd.f32 %v1106_v38, %v683_v36 }
 0x5ae   :  { %v672_v34 = vmul.f32 %v1130_v25, %v671_v33 }
 0x5b0   :  { %v676_v35 = vsel %vm675_vm1, %v1130_v25, %v672_v34  ;;  %v1075_v25 = vld [vmem:[%s1752_s20 + $0x8] sm:$0xff]  ;;  %s1376_s20 = smov [#allocation14]  }
 0x5b1   :  { %v678_v37 = vmul.f32 %v676_v35, %v650_v3  ;;  %829 = vmatpush.bf16.msra.mxu3 %v1075_v25  ;;  %s919_s15 = sshll.u32 %s1376_s20, 4  ;;  %s920_s15 = int_to_ptr.vmem [resolvable:$true] %s919_s15 }
 0x5b3   :  { %v684_v39 = vmul.f32 %v1105_v31, %v678_v37 }
 0x5b5   :  { %v1687_v41 = vadd.f32 %v1106_v38, %v684_v39  ;;  %830 = vmatpush.bf16.msra.mxu3 %v1074_v26 }
 0x5b7   :  { %v691_v42 = vpack.c.bf16 %v1687_v41, %v1685_v40 }
 0x5b9   :  { %1030 = vmatmul.msk.bf16.vlgmr.msra.gmra.mxu2 %vm201_vm0, %v691_v42  ;;  %1056 = vmatmul.msk.bf16.vlgmr.msrb.gmra.mxu0 %vm201_vm0, %v691_v42 }
 0x5ba   :  { %1057 = vmatmul.msk.bf16.vlgmr.msrb.gmra.mxu1 %vm201_vm0, %v691_v42 }
 0x636   :  { %v878_v46 = vpop.f32.mrf.mxu0 }
 0x637   :  { %v879_v47 = vadd.f32 %v878_v46, %v845_v44  ;;  %v892_v48 = vpop.f32.mrf.mxu1 }
 0x638   :  { %v893_v49 = vadd.f32 %v892_v48, %v846_v45 }
 0x63a   :  { %v897_v50 = vpack.c.bf16 %v893_v49, %v879_v47 }
 0x63c   :  { %901 = vst.msk [vmem:[#allocation16] sm:$0xff] %vm900_vm4, %v897_v50  ;;  %v720_v51 = vpop.f32.mrf.mxu2 }
 0x63d   :  { %1131 = vtanh.f32 %v720_v51 }
 0x63e   :  { %v880_v52 = vpop.f32.mrf.mxu0 }
 0x63f   :  { %v881_v53 = vadd.f32 %v880_v52, %v845_v44  ;;  %v894_v54 = vpop.f32.mrf.mxu1 }
 0x640   :  { %v895_v55 = vadd.f32 %v894_v54, %v846_v45 }
 0x642   :  { %v898_v57 = vpack.c.bf16 %v895_v55, %v881_v53 }
 0x643   :  { %v1132_v58 = vpop.eup %1131 }
 0x644   :  { %902 = vst.msk [vmem:[#allocation16 + $0x8] sm:$0xff] %vm900_vm4, %v898_v57  ;;  %v722_v59 = vpop.f32.mrf.mxu2  ;;  %v731_v60 = vmul.f32 %v1132_v58, %v1107_v56 }
 0x645   :  { %1133 = vtanh.f32 %v722_v59 }
 0x646   :  { %v733_v61 = vsel %vm201_vm0, %v731_v60, 0.0 }
 0x647   :  { %734 = vadd.xlane.f32.xlu0 %v733_v61 }
 0x64b   :  { %v1134_v62 = vpop.eup %1133 }
 0x64c   :  { %v732_v63 = vmul.f32 %v1134_v62, %v1107_v56 }
 0x64e   :  { %v736_v0 = vsel %vm201_vm0, %v732_v63, 0.0 }
 0x64f   :  { %737 = vadd.xlane.f32.xlu1 %v736_v0 }
 0x6ba   :  { %v735_v5 = vpop.xlane.xlu0 %734 }
 0x6bb   :  { %v744_v7 = vperm.slane %v735_v5, %v743_v4 }
 0x6c2   :  { %v738_v6 = vpop.xlane.xlu1 %737 }
 0x6c3   :  { %v745_v8 = vperm.slane %v738_v6, %v743_v4 }
 0x6c5   :  { %v747_v9 = vsel %vm746_vm2, %v745_v8, %v744_v7 }
 0x6c6   :  { %v749_v10 = vsel %vm739_vm5, %v747_v9, -1e+30 }
 0x6c7   :  { %v751_v11 = vsel %vm750_vm6, %v749_v10, -inf }
 0x6c8   :  { %752 = vmax.xlane.f32.xlu2 %v751_v11 }
 0x73b   :  { %v753_v12 = vpop.xlane.xlu2 %752 }
 0x73c   :  { %v754_v13 = vsub.f32 %v749_v10, %v753_v12 }
 0x73e   :  { %v755_v14 = vmul.f32 1.442695, %v754_v13 }
 0x740   :  { %1135 = vpow2.f32 %v755_v14 }
 0x746   :  { %v1136_v15 = vpop.eup %1135 }
 0x747   :  { %v757_v16 = vsel %vm750_vm6, %v1136_v15, 0.0 }
 0x748   :  { %758 = vadd.xlane.f32.xlu0 %v757_v16 }
 0x7bb   :  { %v759_v24 = vpop.xlane.xlu0 %758 }
 0x7bc   :  { %1137 = vrcp.f32 %v759_v24 }
 0x7c2   :  { %v1138_v18 = vpop.eup %1137 }
 0x7c3   :  { %v761_v19 = vmul.f32 %v1138_v18, %v1136_v15 }
 0x7c5   :  { %838 = vst.msk [vmem:[#allocation14] sm:$0x3] %vm750_vm6, %v761_v19  ;;  %v769_v20 = vperm.slane %v761_v19, 1  ;;  %v762_v21 = vperm.slane %v761_v19, 0 }
 0x7c6   :  { %924 = dma.vmem_to_hbm [thread:$0]  %s920_s15, 32, %s922_s21, [#allocation15]  }
 0x7c7   :  { %774 = vperm.xlu2 %1095, %v769_v20   ;;  %767 = vperm.xlu1 %1094, %v762_v21   ;;  %937 = dma.vmem_to_hbm [thread:$0]  %s930_s18, 256, %s932_s0, [#allocation15], %s1378_s9, %s1378_s9, %s1379_s2  }
 0x821   :  { %v775_v22 = vpop.permute.xlu2 %774 }
 0x822   :  { %v777_v23 = vmul.f32 %v775_v22, %v1687_v41 }
 0x824   :  { %v785_v27 = vsel %vm201_vm0, %v777_v23, 0.0 }
 0x825   :  { %v786_v28 = vrot.slane %v785_v27, 4 }
 0x827   :  { %v787_v2 = vadd.f32 %v786_v28, %v785_v27 }
 0x829   :  { %v788_v29 = vrot.slane %v787_v2, 2 }
 0x82b   :  { %v789_v31 = vadd.f32 %v788_v29, %v787_v2 }
 0x82d   :  { %v790_v3 = vrot.slane %v789_v31, 1 }
 0x82f   :  { %v791_v37 = vadd.f32 %v790_v3, %v789_v31 }
 0x831   :  { %v793_v41 = vpack.c.bf16 %v791_v37, %v791_v37 }
 0x833   :  { %v805_v44 = vunpack.c.l.b16 %v793_v41 }
 0x839   :  { %v768_v30 = vpop.permute.xlu1 %767 }
 0x83a   :  { %v776_v33 = vmul.f32 %v768_v30, %v1685_v40  ;;  %v1108_v40 = vld [vmem:[%s1784_s4] ss:$0 sm:$0xff] }
 0x83c   :  { %v778_v32 = vsel %vm201_vm0, %v776_v33, 0.0 }
 0x83d   :  { %v779_v34 = vrot.slane %v778_v32, 4 }
 0x83f   :  { %v780_v35 = vadd.f32 %v779_v34, %v778_v32 }
 0x841   :  { %v781_v36 = vrot.slane %v780_v35, 2 }
 0x843   :  { %v782_v38 = vadd.f32 %v781_v36, %v780_v35 }
 0x845   :  { %v783_v39 = vrot.slane %v782_v38, 1 }
 0x847   :  { %v784_v42 = vadd.f32 %v783_v39, %v782_v38 }
 0x849   :  { %v792_v43 = vpack.c.bf16 %v784_v42, %v784_v42 }
 0x84b   :  { %v804_v45 = vunpack.c.l.b16 %v792_v43 }
 0x84d   :  { %v806_v46 = vsel %vm746_vm2, %v805_v44, %v804_v45 }
 0x84e   :  { %v807_v47 = vpack.c.b16 %v806_v46, %v806_v46 }
 0x850   :  { %1039 = vmatmul.msk.bf16.vlgmr.msra.gmra.mxu3 %vm201_vm0, %v807_v47  ;;  %vm836_vm0 = vcmask 41984  }
 0x8d3   :  { %v832_v48 = vpop.f32.mrf.mxu3 }
 0x8d4   :  { %v833_v49 = vadd.f32 %v1108_v40, %v832_v48 }
 0x8d6   :  { %837 = vst.msk [vmem:[#allocation13] sm:$0x3] %vm836_vm0, %v833_v49 }
 0x8d7   :  { %913 = dma.vmem_to_hbm [thread:$0]  %s909_s25, 32, %s911_s11, [#allocation4]  }
 0x8db   :  { %v834_v50 = vpop.f32.mrf.mxu3 }
 0x8dc   :  { %1363 = dma.done.wait [#allocation4], 32  }
 0x8dd   :  { %1364 = vsyncadd [#allocation4], 4294967264 }
 0x8de   :  { %1365 = dma.done.wait [#allocation15], 288  }
 0x8df   :  { %1366 = vsyncadd [#allocation15], 4294967008 }
 0x8e0   :  { %950 = vsyncpa [#allocation3], 1 }
 0x8e1   :  { %951 = vsyncpa [#allocation6], 1 }
 0x8e2   :  { %952 = vsyncpa [#allocation9], 1 }
 0x8e3   :  { %953 = vsyncpa [#allocation12], 1 }
 0x8e4   :  { %954 = vsyncpa [#allocation4], 1 }
 0x8e5   :  { %955 = vsyncpa [#allocation15], 1 }

</bundles_post_ra>
